<compile_context>
chip_gen: v7x
topology: tpu7x:2x2x1
jax: 0.10.0
libtpu: 0.0.40
codegen_flags: <defaults>
</compile_context>

<pallas_src>
import functools

import jax
import jax.numpy as jnp
import numpy as np
from jax.experimental import pallas as pl
from jax.experimental.pallas import tpu as pltpu


def _probe_kernel(x_ref, w_ref, idx_ref, po_ref, pcl_ref, *,
                  n_modes, n_options, rc, n_batch, n_pos_tile):
    x = x_ref[...]                                   # (rows, D), rows = pt * B (pos-major)
    w = w_ref[...]                                   # (D, M*O*RC), resident across the grid

    # Single fused MXU matmul for all modes & options, f32 accumulation.
    logits = jnp.dot(x, w, preferred_element_type=jnp.float32)    # (rows, M*O*RC)

    # Lane-dense raw-logit writeback (probe_out before softmax).
    po_ref[...] = logits.astype(po_ref.dtype)

    # Correct-option indices (int8 or int32 in HBM); widen once for the compares.
    idx = idx_ref[...].astype(jnp.int32)             # (rows, M*RC)

    scale = 3.0 / (n_batch * n_options)              # einops 'mean' over (batch, options) * 3

    for m in range(n_modes):                         # M is small & static -> unrolled
        base = m * n_options * rc
        cols = [logits[:, base + o * rc: base + (o + 1) * rc]     # (rows, RC) each
                for o in range(n_options)]

        # Numerically stable log-softmax over the options axis.
        mx = cols[0]
        for o in range(1, n_options):
            mx = jnp.maximum(mx, cols[o])
        sum_exp = jnp.exp(cols[0] - mx)
        for o in range(1, n_options):
            sum_exp = sum_exp + jnp.exp(cols[o] - mx)
        lse = jnp.log(sum_exp)

        # Correct-option logit via integer compares (replaces the f32 one-hot).
        # NOTE: an index outside [0, n_options) would silently select 0.0 here;
        # indices are argmax/randint derived upstream so this cannot happen.
        idx_m = idx[:, m * rc:(m + 1) * rc]
        sel = jnp.where(idx_m == 0, cols[0], 0.0)
        for o in range(1, n_options):
            sel = sel + jnp.where(idx_m == o, cols[o], 0.0)
        picked = sel - mx - lse                       # (rows, RC) correct-option log-prob

        # Pos-major rows: each pos group holds B contiguous batch rows -> sublane-aligned
        # batch-sum (no relayout when B % 8 == 0).  Each tile owns its pcl rows entirely.
        contrib = jnp.sum(picked.reshape(n_pos_tile, n_batch, rc), axis=1)   # (pt, RC)
        pcl_ref[:, m * rc:(m + 1) * rc] = contrib * scale


def _pick_pos_tile(n_pos, n_batch, bytes_per_row, w_bytes, target_rows, budget_bytes):
    """Largest pos-tile pt (a divisor of P) whose rows = pt*B fit the row target,
    prefer 32-row alignment (covers f32/bf16/int8 sublane tiles), and whose
    double-buffered blocks fit the VMEM budget."""
    divisors = sorted((d for d in range(1, n_pos + 1) if n_pos % d == 0), reverse=True)

    def fits(pt):
        return 2 * pt * n_batch * bytes_per_row + 2 * w_bytes <= budget_bytes

    for pt in divisors:                                   # pass 1: aligned + under target
        rows = pt * n_batch
        if rows <= target_rows and rows % 32 == 0 and fits(pt):
            return pt
    for pt in divisors:                                   # pass 2: under target (Mosaic pads)
        if pt * n_batch <= target_rows and fits(pt):
            return pt
    for pt in reversed(divisors):                         # pass 3: smallest that fits VMEM
        if fits(pt):
            return pt
    return 1


def linear_probe_forward(x, probe, state_stack_one_hot=None, *, state_indices=None,
                         matmul_dtype=jnp.bfloat16, probe_out_dtype=jnp.bfloat16,
                         target_rows=2048, vmem_budget_bytes=40 * 1024 * 1024,
                         return_native_layout=False):
    B, P, D = x.shape
    M, D2, R, C, O = probe.shape
    assert D == D2
    RC, ORC = R * C, O * R * C
    MRC, MORC = M * RC, M * ORC

    # Prefer integer indices from the caller; fall back to argmax of the one-hot.
    if state_indices is None:
        assert state_stack_one_hot is not None
        state_indices = jnp.argmax(state_stack_one_hot, axis=-1)        # (M, B, P, R, C)

    mm_item = jnp.dtype(matmul_dtype).itemsize
    po_item = jnp.dtype(probe_out_dtype).itemsize
    bytes_per_row = D * mm_item + MORC * po_item + MRC + 8              # idx assumed int8
    w_bytes = D * MORC * mm_item

    pt = _pick_pos_tile(P, B, bytes_per_row, w_bytes, target_rows, vmem_budget_bytes)
    rows = pt * B
    n_tiles = P // pt
    idx_dtype = jnp.int8 if rows % 32 == 0 else jnp.int32

    # Wrapper-side layout plumbing (cheap XLA ops, done once).
    x2 = jnp.transpose(x, (1, 0, 2)).reshape(P * B, D).astype(matmul_dtype)      # pos-major
    w_fused = (jnp.transpose(probe, (1, 0, 4, 2, 3))                              # (D,M,O,R,C)
               .reshape(D, MORC).astype(matmul_dtype))
    idx = (jnp.transpose(state_indices, (2, 1, 0, 3, 4))                          # (P,B,M,R,C)
           .reshape(P * B, MRC).astype(idx_dtype))

    # VMEM limit from actual double-buffered block sizes, capped for v7x (64 MiB physical).
    est = (2 * rows * (D * mm_item + MORC * po_item + MRC * jnp.dtype(idx_dtype).itemsize)
           + 2 * pt * MRC * 4 + 2 * w_bytes)
    vmem_limit = int(min(max(int(est * 1.3), 32 * 1024 * 1024), 48 * 1024 * 1024))

    kernel = functools.partial(_probe_kernel, n_modes=M, n_options=O, rc=RC,
                               n_batch=B, n_pos_tile=pt)

    probe_out_t, pcl_t = pl.pallas_call(
        kernel,
        out_shape=(
            jax.ShapeDtypeStruct((P * B, MORC), probe_out_dtype),
            jax.ShapeDtypeStruct((P, MRC), jnp.float32),
        ),
        grid_spec=pltpu.PrefetchScalarGridSpec(
            num_scalar_prefetch=0,
            grid=(n_tiles,),                                   # disjoint pcl rows -> parallel
            in_specs=[
                pl.BlockSpec((rows, D), lambda t: (t, 0)),
                pl.BlockSpec((D, MORC), lambda t: (0, 0)),     # resident; DMA'd once
                pl.BlockSpec((rows, MRC), lambda t: (t, 0)),
            ],
            out_specs=[
                pl.BlockSpec((rows, MORC), lambda t: (t, 0)),
                pl.BlockSpec((pt, MRC), lambda t: (t, 0)),
            ],
        ),
        compiler_params=pltpu.CompilerParams(
            dimension_semantics=("parallel",),
            vmem_limit_bytes=vmem_limit),
    )(x2, w_fused, idx)

    # pcl: lanes are (m, r, c), rows are pos -> (modes, pos, rows, cols).  Tiny.
    pcl = jnp.transpose(pcl_t.reshape(P, M, R, C), (1, 0, 2, 3))
    # loss = -probe_correct_log_probs[0].mean(pos).sum(rows, cols)
    loss = -(jnp.sum(pcl[0]) / P)

    if return_native_layout:
        # Lane-dense (pos*batch, modes*options*rows*cols) — avoids an extra HBM round
        # trip of the largest tensor if the consumer can take this layout.
        return probe_out_t, loss

    # PyTorch einsum order (modes, batch, pos, rows, cols, options); done in bf16
    # so the reorder moves half the bytes of the f32 version.
    probe_out = jnp.transpose(probe_out_t.reshape(P, B, M, O, R, C), (2, 1, 0, 4, 5, 3))
    return probe_out, loss


def reference_forward(x, probe, oh):
    probe_out = jnp.einsum('bpd,mdrco->mbprco', x, probe)
    lp = jax.nn.log_softmax(probe_out, axis=-1)
    pcl = jnp.mean(lp * oh, axis=(1, 5)) * 3.0               # (modes, pos, rows, cols)
    loss = -pcl[0].mean(0).sum()
    return probe_out, loss


if __name__ == "__main__":
    key = jax.random.PRNGKey(0)
    B, P, D = 8, 16, 32          # batch, pos, d_model  (B multiple of 8 -> aligned batch-sum)
    M, R, C, O = 3, 8, 8, 3      # modes, rows, cols, options

    k1, k2, k3 = jax.random.split(key, 3)
    x = jax.random.normal(k1, (B, P, D), dtype=jnp.float32)
    probe = jax.random.normal(k2, (M, D, R, C, O), dtype=jnp.float32) / np.sqrt(D)
    state_indices = jax.random.randint(k3, (M, B, P, R, C), 0, O)
    state_stack_one_hot = jax.nn.one_hot(state_indices, O, dtype=jnp.float32)   # ref only

    # target_rows=64 -> 2 pos-tiles of 64 rows each: exercises the multi-tile "parallel"
    # grid, the int8 idx path and the bf16 matmul.
    fwd = jax.jit(functools.partial(linear_probe_forward, target_rows=64))
    probe_out, loss = fwd(x, probe, state_indices=state_indices)
    jax.block_until_ready((probe_out, loss))

    ref_out, ref_loss = reference_forward(x, probe, state_stack_one_hot)

    # bf16 inputs / bf16 probe_out vs. the f32 reference -> loosened tolerances.
    np.testing.assert_allclose(np.asarray(probe_out).astype(np.float32),
                               np.asarray(ref_out), rtol=5e-2, atol=5e-2)
    np.testing.assert_allclose(float(loss), float(ref_loss), rtol=2e-2, atol=0.5)
    print("KERNEL_OK")
</pallas_src>

<mosaic_0001>
module attributes {stable_mosaic.version = 11 : i64} {
  func.func @_probe_kernel(%arg0: i32, %arg1: memref<64x32xbf16, #tpu.memory_space<vmem>>, %arg2: memref<32x576xbf16, #tpu.memory_space<vmem>>, %arg3: memref<64x192xi8, #tpu.memory_space<vmem>>, %arg4: memref<64x576xbf16, #tpu.memory_space<vmem>>, %arg5: memref<8x192xf32, #tpu.memory_space<vmem>>) attributes {dimension_semantics = [#tpu.dimension_semantics<parallel>], iteration_bounds = array<i64: 2>, scalar_prefetch = 0 : i64, scratch_operands = 0 : i64, tpu.core_type = #tpu.core_type<tc>, window_params = [{transform_indices = @transform_0, window_bounds = array<i64: 64, 32>}, {pipeline_mode = #tpu.pipeline_mode<synchronous>, transform_indices = @transform_1, window_bounds = array<i64: 32, 576>}, {transform_indices = @transform_2, window_bounds = array<i64: 64, 192>}, {transform_indices = @transform_3, window_bounds = array<i64: 64, 576>}, {transform_indices = @transform_4, window_bounds = array<i64: 8, 192>}]} {
    %c0 = arith.constant 0 : index
    %c0_0 = arith.constant 0 : index
    %0 = vector.load %arg1[%c0, %c0_0] : memref<64x32xbf16, #tpu.memory_space<vmem>>, vector<64x32xbf16>
    %c0_1 = arith.constant 0 : index
    %c0_2 = arith.constant 0 : index
    %1 = vector.load %arg2[%c0_1, %c0_2] : memref<32x576xbf16, #tpu.memory_space<vmem>>, vector<32x576xbf16>
    %cst = arith.constant dense<0.000000e+00> : vector<64x576xf32>
    %2 = tpu.matmul %0, %1, %cst {dimension_numbers = #tpu.dot_dimension_numbers<[1], [0], [0], [1], [0, 0, 1, 1], [], []>} : vector<64x32xbf16>, vector<32x576xbf16>, vector<64x576xf32> -> vector<64x576xf32>
    %3 = arith.truncf %2 : vector<64x576xf32> to vector<64x576xbf16>
    %c0_3 = arith.constant 0 : index
    %c0_4 = arith.constant 0 : index
    %4 = vector.load %arg4[%c0_3, %c0_4] : memref<64x576xbf16, #tpu.memory_space<vmem>>, vector<64x576xbf16>
    tpu.vector_store %arg4[%c0_3, %c0_4], %3 {strides = array<i32>} : memref<64x576xbf16, #tpu.memory_space<vmem>>, vector<64x576xbf16>,
    %c0_5 = arith.constant 0 : index
    %c0_6 = arith.constant 0 : index
    %5 = vector.load %arg3[%c0_5, %c0_6] : memref<64x192xi8, #tpu.memory_space<vmem>>, vector<64x192xi8>
    %6 = arith.extsi %5 : vector<64x192xi8> to vector<64x192xi32>
    %7 = vector.extract_strided_slice %2 {offsets = [0, 0], sizes = [64, 64], strides = [1, 1]} : vector<64x576xf32> to vector<64x64xf32>
    %8 = vector.extract_strided_slice %2 {offsets = [0, 64], sizes = [64, 64], strides = [1, 1]} : vector<64x576xf32> to vector<64x64xf32>
    %9 = vector.extract_strided_slice %2 {offsets = [0, 128], sizes = [64, 64], strides = [1, 1]} : vector<64x576xf32> to vector<64x64xf32>
    %10 = arith.maximumf %7, %8 : vector<64x64xf32>
    %11 = arith.maximumf %10, %9 : vector<64x64xf32>
    %12 = arith.subf %7, %11 : vector<64x64xf32>
    %13 = math.exp %12 : vector<64x64xf32>
    %14 = arith.subf %8, %11 : vector<64x64xf32>
    %15 = math.exp %14 : vector<64x64xf32>
    %16 = arith.addf %13, %15 : vector<64x64xf32>
    %17 = arith.subf %9, %11 : vector<64x64xf32>
    %18 = math.exp %17 : vector<64x64xf32>
    %19 = arith.addf %16, %18 : vector<64x64xf32>
    %20 = math.log %19 : vector<64x64xf32>
    %21 = vector.extract_strided_slice %6 {offsets = [0, 0], sizes = [64, 64], strides = [1, 1]} : vector<64x192xi32> to vector<64x64xi32>
    %c0_i32 = arith.constant 0 : i32
    %22 = vector.broadcast %c0_i32 : i32 to vector<64x64xi32>
    %23 = arith.cmpi eq, %21, %22 : vector<64x64xi32>
    %cst_7 = arith.constant 0.000000e+00 : f32
    %24 = vector.broadcast %cst_7 : f32 to vector<64x64xf32>
    %25 = arith.select %23, %7, %24 : vector<64x64xi1>, vector<64x64xf32>
    %c1_i32 = arith.constant 1 : i32
    %26 = vector.broadcast %c1_i32 : i32 to vector<64x64xi32>
    %27 = arith.cmpi eq, %21, %26 : vector<64x64xi32>
    %cst_8 = arith.constant 0.000000e+00 : f32
    %28 = vector.broadcast %cst_8 : f32 to vector<64x64xf32>
    %29 = arith.select %27, %8, %28 : vector<64x64xi1>, vector<64x64xf32>
    %30 = arith.addf %25, %29 : vector<64x64xf32>
    %c2_i32 = arith.constant 2 : i32
    %31 = vector.broadcast %c2_i32 : i32 to vector<64x64xi32>
    %32 = arith.cmpi eq, %21, %31 : vector<64x64xi32>
    %cst_9 = arith.constant 0.000000e+00 : f32
    %33 = vector.broadcast %cst_9 : f32 to vector<64x64xf32>
    %34 = arith.select %32, %9, %33 : vector<64x64xi1>, vector<64x64xf32>
    %35 = arith.addf %30, %34 : vector<64x64xf32>
    %36 = arith.subf %35, %11 : vector<64x64xf32>
    %37 = arith.subf %36, %20 : vector<64x64xf32>
    %38 = vector.shape_cast %37 : vector<64x64xf32> to vector<8x8x64xf32>
    %cst_10 = arith.constant dense<0.000000e+00> : vector<8x64xf32>
    %39 = vector.multi_reduction <add>, %38, %cst_10 [1] : vector<8x8x64xf32> to vector<8x64xf32>
    %cst_11 = arith.constant 1.250000e-01 : f32
    %40 = vector.broadcast %cst_11 : f32 to vector<8x64xf32>
    %41 = arith.mulf %39, %40 : vector<8x64xf32>
    %c0_12 = arith.constant 0 : index
    %c0_13 = arith.constant 0 : index
    %42 = vector.load %arg5[%c0_12, %c0_13] : memref<8x192xf32, #tpu.memory_space<vmem>>, vector<8x64xf32>
    tpu.vector_store %arg5[%c0_12, %c0_13], %41 {strides = array<i32>} : memref<8x192xf32, #tpu.memory_space<vmem>>, vector<8x64xf32>,
    %43 = vector.extract_strided_slice %2 {offsets = [0, 192], sizes = [64, 64], strides = [1, 1]} : vector<64x576xf32> to vector<64x64xf32>
    %44 = vector.extract_strided_slice %2 {offsets = [0, 256], sizes = [64, 64], strides = [1, 1]} : vector<64x576xf32> to vector<64x64xf32>
    %45 = vector.extract_strided_slice %2 {offsets = [0, 320], sizes = [64, 64], strides = [1, 1]} : vector<64x576xf32> to vector<64x64xf32>
    %46 = arith.maximumf %43, %44 : vector<64x64xf32>
    %47 = arith.maximumf %46, %45 : vector<64x64xf32>
    %48 = arith.subf %43, %47 : vector<64x64xf32>
    %49 = math.exp %48 : vector<64x64xf32>
    %50 = arith.subf %44, %47 : vector<64x64xf32>
    %51 = math.exp %50 : vector<64x64xf32>
    %52 = arith.addf %49, %51 : vector<64x64xf32>
    %53 = arith.subf %45, %47 : vector<64x64xf32>
    %54 = math.exp %53 : vector<64x64xf32>
    %55 = arith.addf %52, %54 : vector<64x64xf32>
    %56 = math.log %55 : vector<64x64xf32>
    %57 = vector.extract_strided_slice %6 {offsets = [0, 64], sizes = [64, 64], strides = [1, 1]} : vector<64x192xi32> to vector<64x64xi32>
    %c0_i32_14 = arith.constant 0 : i32
    %58 = vector.broadcast %c0_i32_14 : i32 to vector<64x64xi32>
    %59 = arith.cmpi eq, %57, %58 : vector<64x64xi32>
    %cst_15 = arith.constant 0.000000e+00 : f32
    %60 = vector.broadcast %cst_15 : f32 to vector<64x64xf32>
    %61 = arith.select %59, %43, %60 : vector<64x64xi1>, vector<64x64xf32>
    %c1_i32_16 = arith.constant 1 : i32
    %62 = vector.broadcast %c1_i32_16 : i32 to vector<64x64xi32>
    %63 = arith.cmpi eq, %57, %62 : vector<64x64xi32>
    %cst_17 = arith.constant 0.000000e+00 : f32
    %64 = vector.broadcast %cst_17 : f32 to vector<64x64xf32>
    %65 = arith.select %63, %44, %64 : vector<64x64xi1>, vector<64x64xf32>
    %66 = arith.addf %61, %65 : vector<64x64xf32>
    %c2_i32_18 = arith.constant 2 : i32
    %67 = vector.broadcast %c2_i32_18 : i32 to vector<64x64xi32>
    %68 = arith.cmpi eq, %57, %67 : vector<64x64xi32>
    %cst_19 = arith.constant 0.000000e+00 : f32
    %69 = vector.broadcast %cst_19 : f32 to vector<64x64xf32>
    %70 = arith.select %68, %45, %69 : vector<64x64xi1>, vector<64x64xf32>
    %71 = arith.addf %66, %70 : vector<64x64xf32>
    %72 = arith.subf %71, %47 : vector<64x64xf32>
    %73 = arith.subf %72, %56 : vector<64x64xf32>
    %74 = vector.shape_cast %73 : vector<64x64xf32> to vector<8x8x64xf32>
    %cst_20 = arith.constant dense<0.000000e+00> : vector<8x64xf32>
    %75 = vector.multi_reduction <add>, %74, %cst_20 [1] : vector<8x8x64xf32> to vector<8x64xf32>
    %cst_21 = arith.constant 1.250000e-01 : f32
    %76 = vector.broadcast %cst_21 : f32 to vector<8x64xf32>
    %77 = arith.mulf %75, %76 : vector<8x64xf32>
    %c0_22 = arith.constant 0 : index
    %c64 = arith.constant 64 : index
    %78 = vector.load %arg5[%c0_22, %c64] : memref<8x192xf32, #tpu.memory_space<vmem>>, vector<8x64xf32>
    tpu.vector_store %arg5[%c0_22, %c64], %77 {strides = array<i32>} : memref<8x192xf32, #tpu.memory_space<vmem>>, vector<8x64xf32>,
    %79 = vector.extract_strided_slice %2 {offsets = [0, 384], sizes = [64, 64], strides = [1, 1]} : vector<64x576xf32> to vector<64x64xf32>
    %80 = vector.extract_strided_slice %2 {offsets = [0, 448], sizes = [64, 64], strides = [1, 1]} : vector<64x576xf32> to vector<64x64xf32>
    %81 = vector.extract_strided_slice %2 {offsets = [0, 512], sizes = [64, 64], strides = [1, 1]} : vector<64x576xf32> to vector<64x64xf32>
    %82 = arith.maximumf %79, %80 : vector<64x64xf32>
    %83 = arith.maximumf %82, %81 : vector<64x64xf32>
    %84 = arith.subf %79, %83 : vector<64x64xf32>
    %85 = math.exp %84 : vector<64x64xf32>
    %86 = arith.subf %80, %83 : vector<64x64xf32>
    %87 = math.exp %86 : vector<64x64xf32>
    %88 = arith.addf %85, %87 : vector<64x64xf32>
    %89 = arith.subf %81, %83 : vector<64x64xf32>
    %90 = math.exp %89 : vector<64x64xf32>
    %91 = arith.addf %88, %90 : vector<64x64xf32>
    %92 = math.log %91 : vector<64x64xf32>
    %93 = vector.extract_strided_slice %6 {offsets = [0, 128], sizes = [64, 64], strides = [1, 1]} : vector<64x192xi32> to vector<64x64xi32>
    %c0_i32_23 = arith.constant 0 : i32
    %94 = vector.broadcast %c0_i32_23 : i32 to vector<64x64xi32>
    %95 = arith.cmpi eq, %93, %94 : vector<64x64xi32>
    %cst_24 = arith.constant 0.000000e+00 : f32
    %96 = vector.broadcast %cst_24 : f32 to vector<64x64xf32>
    %97 = arith.select %95, %79, %96 : vector<64x64xi1>, vector<64x64xf32>
    %c1_i32_25 = arith.constant 1 : i32
    %98 = vector.broadcast %c1_i32_25 : i32 to vector<64x64xi32>
    %99 = arith.cmpi eq, %93, %98 : vector<64x64xi32>
    %cst_26 = arith.constant 0.000000e+00 : f32
    %100 = vector.broadcast %cst_26 : f32 to vector<64x64xf32>
    %101 = arith.select %99, %80, %100 : vector<64x64xi1>, vector<64x64xf32>
    %102 = arith.addf %97, %101 : vector<64x64xf32>
    %c2_i32_27 = arith.constant 2 : i32
    %103 = vector.broadcast %c2_i32_27 : i32 to vector<64x64xi32>
    %104 = arith.cmpi eq, %93, %103 : vector<64x64xi32>
    %cst_28 = arith.constant 0.000000e+00 : f32
    %105 = vector.broadcast %cst_28 : f32 to vector<64x64xf32>
    %106 = arith.select %104, %81, %105 : vector<64x64xi1>, vector<64x64xf32>
    %107 = arith.addf %102, %106 : vector<64x64xf32>
    %108 = arith.subf %107, %83 : vector<64x64xf32>
    %109 = arith.subf %108, %92 : vector<64x64xf32>
    %110 = vector.shape_cast %109 : vector<64x64xf32> to vector<8x8x64xf32>
    %cst_29 = arith.constant dense<0.000000e+00> : vector<8x64xf32>
    %111 = vector.multi_reduction <add>, %110, %cst_29 [1] : vector<8x8x64xf32> to vector<8x64xf32>
    %cst_30 = arith.constant 1.250000e-01 : f32
    %112 = vector.broadcast %cst_30 : f32 to vector<8x64xf32>
    %113 = arith.mulf %111, %112 : vector<8x64xf32>
    %c0_31 = arith.constant 0 : index
    %c128 = arith.constant 128 : index
    %114 = vector.load %arg5[%c0_31, %c128] : memref<8x192xf32, #tpu.memory_space<vmem>>, vector<8x64xf32>
    tpu.vector_store %arg5[%c0_31, %c128], %113 {strides = array<i32>} : memref<8x192xf32, #tpu.memory_space<vmem>>, vector<8x64xf32>,
    return
  }
  func.func @transform_0(%arg0: i32) -> (i32, i32) {
    %c0_i32 = arith.constant 0 : i32
    %c0_i32_0 = arith.constant 0 : i32
    return %arg0, %c0_i32 : i32, i32
  }
  func.func @transform_1(%arg0: i32) -> (i32, i32) {
    %c0_i32 = arith.constant 0 : i32
    %c0_i32_0 = arith.constant 0 : i32
    %c0_i32_1 = arith.constant 0 : i32
    return %c0_i32, %c0_i32_0 : i32, i32
  }
  func.func @transform_2(%arg0: i32) -> (i32, i32) {
    %c0_i32 = arith.constant 0 : i32
    %c0_i32_0 = arith.constant 0 : i32
    return %arg0, %c0_i32 : i32, i32
  }
  func.func @transform_3(%arg0: i32) -> (i32, i32) {
    %c0_i32 = arith.constant 0 : i32
    %c0_i32_0 = arith.constant 0 : i32
    return %arg0, %c0_i32 : i32, i32
  }
  func.func @transform_4(%arg0: i32) -> (i32, i32) {
    %c0_i32 = arith.constant 0 : i32
    %c0_i32_0 = arith.constant 0 : i32
    return %arg0, %c0_i32 : i32, i32
  }
}

</mosaic_0001>

<bundles_post_ra>
// kernel: linear_probe_forward.1
= control target key start
LH: loop header
LB: loop body
LE: loop exit
PB: predicated region body
PF: predicated region fallthrough
CT: control target
= control target key end

     0   :  { %s2320_s15 = smov 0   ;;  %s3720_s0 = inlined_call_operand.vmem [shape: bf16[128,32], index: 0, kind: input, shape index: {}]   ;;  %s3721_s1 = inlined_call_operand.vmem [shape: bf16[32,576], index: 1, kind: input, shape index: {}]   ;;  %s3722_s2 = inlined_call_operand.vmem [shape: s8[128,192], index: 2, kind: input, shape index: {}]   ;;  %s3723_s3 = inlined_call_operand.vmem [shape: bf16[128,576], index: 3, kind: output, shape index: {0}]   ;;  %s3724_s4 = inlined_call_operand.vmem [shape: f32[16,192], index: 4, kind: output, shape index: {1}]  }
   0x1 LB: > { %s2326_s16 = sadd.s32 4294967295, %s2291_s15   ;;  %p1954_p0 = scmp.ge.s32.totalorder %s2291_s15, 1  ;;  %s2291_s15 = sphi %s2320_s15, %s15_s15  }
   0x2   : > { %p178_p1 = scmp.lt.s32.totalorder %s2291_s15, 3 }
   0x4   : > { %p179_p2 = pnand %p1954_p0, %p178_p1 }
   0x6   : > { %182 = sbr.rel (%p179_p2) target bundleno = 714 (0x2ca), region = 32 }
   0xd   : > { %v2075_v0 = vld [vmem:[%s3721_s1 + $0x4] ss:$20 sps:$4 sm:$0xff]   ;;  %s1955_s19 = sshll.u32 %s2326_s16, 3  ;;  %v2077_v1 = vld [vmem:[%s3721_s1] ss:$20 sps:$4 sm:$0xff]   ;;  %v2293_v2 = vmov 0  }
   0xe   : > { %379 = vmatprep.mubr.bf16.mxu0 %v2293_v2  ;;  %409 = vmatprep.mubr.bf16.mxu1 %v2293_v2  ;;  %p217_p3 = scmp.lt.s32.totalorder %s1955_s19, 15  ;;  %v2078_v3 = vld [vmem:[%s3721_s1 + $0x2c] ss:$20 sps:$4 sm:$0xff]   ;;  %v2080_v4 = vld [vmem:[%s3721_s1 + $0x28] ss:$20 sps:$4 sm:$0xff]   ;;  %vm334_vm0 = vcmask 261120  }
   0xf   : > { %347 = vmatprep.subr.bf16.mxu0 %v2075_v0  ;;  %2060 = vmatprep.subr.bf16.mxu1 %v2075_v0  ;;  %v2085_v5 = vld [vmem:[%s3721_s1 + $0xc] ss:$20 sps:$4 sm:$0xff]   ;;  %v2083_v6 = vld [vmem:[%s3721_s1 + $0x8] ss:$20 sps:$4 sm:$0xff]   ;;  %v2091_v8 = vld [vmem:[%s3721_s1 + $0x10] ss:$20 sps:$4 sm:$0xff]  }
  0x10   : > { %348 = vmatpush1.bf16.msra.mxu0 %v2077_v1  ;;  %2062 = vmatpush1.bf16.msra.mxu1 %v2077_v1  ;;  %s4048_s19 = smov (!%p217_p3, %s1955_s19), 15  ;;  %v2088_v7 = vld [vmem:[%s3721_s1 + $0x34] ss:$20 sps:$4 sm:$0xff]   ;;  %v2086_v11 = vld [vmem:[%s3721_s1 + $0x30] ss:$20 sps:$4 sm:$0xff]   ;;  %s2294_s23 = smov 64  }
  0x11   : > { %349 = vmatprep.subr.bf16.mxu0 %v2078_v3  ;;  %2061 = vmatprep.subr.bf16.mxu1 %v2078_v3  ;;  %s1956_s28 = sshll.u32 %s4048_s19, 2  ;;  %v2092_v12 = vld [vmem:[%s3721_s1 + $0x38] ss:$20 sps:$4 sm:$0xff]   ;;  %s2064_s18 = smul.u32 20, %s4048_s19  ;;  %vm688_vm1 = vcmask 519168  }
  0x12   : > { %s220_s7 = scalar_lea.vmem %s3720_s0, %s1956_s28  ;;  %s1957_s19 = sshll.u32 %s2326_s16, 1 }
  0x13   : > { %v2081_v9 = vld [vmem:[%s220_s7] sm:$0xff]   ;;  %v2082_v10 = vld [vmem:[%s220_s7 + $0x18] sm:$0xff]   ;;  %v2089_v13 = vld [vmem:[%s220_s7 + $0x8] sm:$0xff]   ;;  %s2387_s22 = scalar_lea.vmem %s3723_s3, %s2064_s18  ;;  %p223_p4 = scmp.lt.s32.totalorder %s1957_s19, 3 }
  0x14   : > { %350 = vmatpush1.bf16.msra.mxu0 %v2080_v4  ;;  %2063 = vmatpush1.bf16.msra.mxu1 %v2080_v4  ;;  %v2090_v14 = vld [vmem:[%s220_s7 + $0x10] sm:$0xff]   ;;  %p236_p5 = scmp.lt.s32.totalorder %s2326_s16, 1 }
  0x15   : > { %420 = vmatprep.subr.bf16.mxu1 %v2085_v5  ;;  %2048 = vmatprep.subr.bf16.mxu0 %v2091_v8  ;;  %s4050_s19 = smov (!%p223_p4, %s1957_s19), 3 }
  0x16   : > { %s2016_s24 = sshll.u32 %s4050_s19, 4  ;;  %s4052_s16 = smov (!%p236_p5, %s2326_s16), 1 }
  0x17   : > { %1978 = vmatmul.mubr.msk.bf16.vlgmr.msra.gmra.mrb[0].mxu0 %vm334_vm0, %v2081_v9  ;;  %1981 = vmatmul.mubr.msk.bf16.vlgmr.msra.gmra.mrb[0].mxu1 %vm334_vm0, %v2082_v10  ;;  %s227_s27 = scalar_lea.vmem %s3722_s2, %s2016_s24  ;;  %s2017_s28 = sshll.u32 %s4052_s16, 4 }
  0x18   : > { %421 = vmatpush1.bf16.msra.mxu1 %v2083_v6  ;;  %389 = vmatprep.mubr.bf16.mxu0 %v2293_v2  ;;  %s3693_s30 = scalar_lea.vmem %s3724_s4, %s2017_s28 }
  0x19   : > { %422 = vmatprep.subr.bf16.mxu1 %v2088_v7  ;;  %452 = vmatprep.mubr.bf16.mxu1 %v2293_v2 }
  0x1a   : > { %2049 = vmatpush3.bf16.msra.mxu0 %v2091_v8 }
  0x1b   : > { %2050 = vmatprep.subr.bf16.mxu0 %v2092_v12 }
  0x1c   : > { %423 = vmatpush1.bf16.msra.mxu1 %v2086_v11 }
  0x1e   : > { %2051 = vmatpush3.bf16.msra.mxu0 %v2092_v12 }
  0x1f   : > { %1979 = vmatmul.mubr.msk.bf16.gmra.mrb[4].mxu0 %vm334_vm0, %v2089_v13  ;;  %1982 = vmatmul.mubr.msk.bf16.vlgmr.msra.gmra.mrb[4].mxu1 %vm334_vm0, %v2081_v9 }
  0x20   : > { %462 = vmatprep.mubr.bf16.mxu1 %v2293_v2  ;;  %399 = vmatprep.mubr.bf16.mxu0 %v2293_v2 }
  0x27   : > { %1983 = vmatmul.mubr.msk.bf16.gmra.mrb[8].mxu1 %vm334_vm0, %v2089_v13  ;;  %1980 = vmatmul.mubr.msk.bf16.gmra.mrb[8].mxu0 %vm334_vm0, %v2090_v14 }
  0x28   : > { %472 = vmatprep.mubr.bf16.mxu1 %v2293_v2  ;;  %2052 = vmatprep.mubr.msk.bf16.mxu0 %vm334_vm0, %v2081_v9 }
  0x2f   : > { %1984 = vmatmul.mubr.msk.bf16.gmra.mrb[12].mxu1 %vm334_vm0, %v2090_v14  ;;  %2053 = vmatmul.mubr.msk.bf16.vlgmr.msra.gmra.mrb[12].mxu0 %vm334_vm0, %v2089_v13 }
  0x30   : > { %482 = vmatprep.mubr.bf16.mxu1 %v2293_v2  ;;  %2056 = vmatprep.mubr.msk.bf16.mxu0 %vm334_vm0, %v2090_v14 }
  0x37   : > { %1985 = vmatmul.mubr.msk.bf16.gmra.mrb[16].mxu1 %vm334_vm0, %v2082_v10  ;;  %2057 = vmatmul.mubr.msk.bf16.gmra.mrb[16].mxu0 %vm334_vm0, %v2082_v10 }
  0xea   : > { %v2380_v15 = vpop.f32.mrb[0].mxu0  ;;  %v2382_v16 = vpop.f32.mrb[0].mxu1 }
  0xeb   : > { %3823 = vst [vmem:[#allocation2_spill] sm:$0xff] %v2380_v15  ;;  %3824 = vst [vmem:[#allocation3_spill] sm:$0xff] %v2382_v16  ;;  %v2389_v17 = vpop.f32.mrb[1].mxu1  ;;  %739 = vrot.lane.b32.xlu0 %v2380_v15, %s2294_s23  ;;  %v2393_v18 = vpop.f32.mrb[1].mxu0 }
  0xec   : > { %3825 = vst [vmem:[#allocation4_spill] sm:$0xff] %v2389_v17  ;;  %v2036_v19 = vpack.c.bf16 %v2389_v17, %v2382_v16  ;;  %v2018_v20 = vpack.c.bf16 %v2393_v18, %v2380_v15  ;;  %v2399_v21 = vpop.f32.mrb[2].mxu0  ;;  %v2401_v22 = vpop.f32.mrb[2].mxu1 }
  0xed   : > { %3826 = vst [vmem:[#allocation5_spill] sm:$0xff] %v2401_v22  ;;  %753 = vrot.lane.b32.xlu1 %v2401_v22, %s2294_s23  ;;  %v2405_v23 = vpop.f32.mrb[3].mxu0  ;;  %v2407_v24 = vpop.f32.mrb[3].mxu1 }
  0xee   : > { %3827 = vst [vmem:[#allocation6_spill] sm:$0xff] %v2407_v24  ;;  %705 = vst [vmem:[%s2387_s22 + $0x78] sm:$0xff] %v2036_v19  ;;  %v2021_v25 = vpack.c.bf16 %v2405_v23, %v2399_v21  ;;  %v2039_v26 = vpack.c.bf16 %v2407_v24, %v2401_v22  ;;  %v711_v19 = vld [vmem:[%s227_s27] sm:$0xff] }
  0xef   : > { %686 = vst [vmem:[%s2387_s22] sm:$0xff] %v2018_v20  ;;  %751 = vrot.lane.b32.xlu0 %v2382_v16, %s2294_s23  ;;  %v713_v20 = vld [vmem:[%s227_s27 + $0x10] sm:$0xff] }
  0xf0   : > { %690 = vst [vmem:[%s2387_s22 + $0x14] sm:$0xff] %v2021_v25  ;;  %708 = vst [vmem:[%s2387_s22 + $0x8c] sm:$0xff] %v2039_v26  ;;  %v2597_v25 = vunpack.c.0.s8 %v711_v19  ;;  %v2599_v26 = vunpack.c.3.s8 %v713_v20 }
  0xf2   : > { %v2419_v27 = vpop.f32.mrb[4].mxu0  ;;  %v2421_v28 = vpop.f32.mrb[4].mxu1  ;;  %3843 = vst [vmem:[#allocation22_spill] sm:$0xff] %v2599_v26  ;;  %vm947_vm2 = vcmp.eq.s32.totalorder %v2597_v25, 0  ;;  %vm987_vm3 = vcmp.eq.s32.totalorder %v2597_v25, 2  ;;  %vm954_vm4 = vcmp.eq.s32.totalorder %v2599_v26, 0 }
  0xf3   : > { %3828 = vst [vmem:[#allocation7_spill] sm:$0xff] %v2419_v27  ;;  %741 = vrot.lane.b32.xlu0 %v2399_v21, %s2294_s23  ;;  %743 = vrot.lane.b32.xlu1 %v2419_v27, %s2294_s23  ;;  %v2427_v29 = vpop.f32.mrb[5].mxu0  ;;  %v2429_v30 = vpop.f32.mrb[5].mxu1  ;;  %vm994_vm5 = vcmp.eq.s32.totalorder %v2599_v26, 2  ;;  %vm963_vm13 = vcmp.eq.s32.totalorder %v2597_v25, 1  ;;  %vm3753_vm14 = vcmp.eq.s32.totalorder %v2599_v26, 1 }
  0xf4   : > { %v2024_v31 = vpack.c.bf16 %v2427_v29, %v2419_v27  ;;  %v2433_v32 = vpop.f32.mrb[6].mxu0  ;;  %v2019_v33 = vpack.c.bf16 %v2429_v30, %v2421_v28  ;;  %v2437_v34 = vpop.f32.mrb[6].mxu1 }
  0xf5   : > { %v2439_v35 = vpop.f32.mrb[7].mxu0  ;;  %v2441_v36 = vpop.f32.mrb[7].mxu1 }
  0xf6   : > { %693 = vst [vmem:[%s2387_s22 + $0x28] sm:$0xff] %v2024_v31  ;;  %687 = vst [vmem:[%s2387_s22 + $0x8] sm:$0xff] %v2019_v33  ;;  %v2027_v37 = vpack.c.bf16 %v2439_v35, %v2433_v32  ;;  %v2022_v38 = vpack.c.bf16 %v2441_v36, %v2437_v34  ;;  %v712_v31 = vld [vmem:[%s227_s27 + $0x8] sm:$0xff]  ;;  %v2601_v33 = vunpack.c.2.s8 %v713_v20 }
  0xf7   : > { %1126 = vrot.lane.b32.xlu0 %v2437_v34, %s2294_s23  ;;  %1124 = vrot.lane.b32.xlu1 %v2421_v28, %s2294_s23 }
  0xf8   : > { %696 = vst [vmem:[%s2387_s22 + $0x3c] sm:$0xff] %v2027_v37  ;;  %691 = vst [vmem:[%s2387_s22 + $0x1c] sm:$0xff] %v2022_v38  ;;  %v2603_v37 = vunpack.c.1.s8 %v711_v19  ;;  %v2605_v38 = vunpack.c.2.s8 %v711_v19  ;;  %vm953_vm6 = vcmp.eq.s32.totalorder %v2601_v33, 0  ;;  %vm3735_vm7 = vcmp.eq.s32.totalorder %v2601_v33, 2 }
  0xf9   : > { %3844 = vst [vmem:[#allocation23_spill] sm:$0xff] %v2601_v33  ;;  %vm969_vm15 = vcmp.eq.s32.totalorder %v2601_v33, 1 }
  0xfa   : > { %v2455_v39 = vpop.f32.mrb[8].mxu1  ;;  %v2457_v40 = vpop.f32.mrb[8].mxu0  ;;  %vm948_vm8 = vcmp.eq.s32.totalorder %v2603_v37, 0  ;;  %vm988_vm9 = vcmp.eq.s32.totalorder %v2603_v37, 2  ;;  %vm949_vm10 = vcmp.eq.s32.totalorder %v2605_v38, 0  ;;  %vm989_vm11 = vcmp.eq.s32.totalorder %v2605_v38, 2 }
  0xfb   : > { %1480 = vrot.lane.b32.xlu0 %v2441_v36, %s2294_s23  ;;  %1478 = vrot.lane.b32.xlu1 %v2429_v30, %s2294_s23  ;;  %v2463_v41 = vpop.f32.mrb[9].mxu1  ;;  %v2465_v42 = vpop.f32.mrb[9].mxu0 }
  0xfc   : > { %v2025_v43 = vpack.c.bf16 %v2463_v41, %v2455_v39  ;;  %v2469_v44 = vpop.f32.mrb[10].mxu1  ;;  %v2030_v45 = vpack.c.bf16 %v2465_v42, %v2457_v40  ;;  %v2473_v46 = vpop.f32.mrb[10].mxu0 }
  0xfd   : > { %v2475_v47 = vpop.f32.mrb[11].mxu1  ;;  %v2477_v48 = vpop.f32.mrb[11].mxu0 }
  0xfe   : > { %3829 = vst [vmem:[#allocation8_spill] sm:$0xff] %v2477_v48  ;;  %694 = vst [vmem:[%s2387_s22 + $0x30] sm:$0xff] %v2025_v43  ;;  %v2028_v49 = vpack.c.bf16 %v2475_v47, %v2469_v44  ;;  %v2033_v50 = vpack.c.bf16 %v2477_v48, %v2473_v46  ;;  %v2607_v43 = vunpack.c.0.s8 %v712_v31 }
  0xff   : > { %699 = vst [vmem:[%s2387_s22 + $0x50] sm:$0xff] %v2030_v45  ;;  %1128 = vrot.lane.b32.xlu0 %v2455_v39, %s2294_s23  ;;  %745 = vrot.lane.b32.xlu1 %v2433_v32, %s2294_s23  ;;  %v714_v45 = vld [vmem:[%s227_s27 + $0x18] sm:$0xff] }
 0x100   : > { %697 = vst [vmem:[%s2387_s22 + $0x44] sm:$0xff] %v2028_v49  ;;  %702 = vst [vmem:[%s2387_s22 + $0x64] sm:$0xff] %v2033_v50  ;;  %v2618_v49 = vunpack.c.1.s8 %v712_v31  ;;  %v2620_v50 = vunpack.c.3.s8 %v711_v19  ;;  %v1001_v19 = vsel %vm3735_vm7, %v2389_v17, 0.0 }
 0x102   : > { %v2491_v51 = vpop.f32.mrb[12].mxu1  ;;  %v2493_v52 = vpop.f32.mrb[12].mxu0  ;;  %vm1687_vm0 = vcmp.eq.s32.totalorder %v2618_v49, 0  ;;  %vm950_vm12 = vcmp.eq.s32.totalorder %v2620_v50, 0  ;;  %vm990_vm7 = vcmp.eq.s32.totalorder %v2620_v50, 2 }
 0x103   : > { %1482 = vrot.lane.b32.xlu1 %v2463_v41, %s2294_s23  ;;  %747 = vrot.lane.b32.xlu0 %v2457_v40, %s2294_s23  ;;  %v2499_v53 = vpop.f32.mrb[13].mxu1  ;;  %v2026_v54 = vpack.c.bf16 %v2493_v52, %v2493_v52  ;;  %v2503_v55 = vpop.f32.mrb[13].mxu0 }
 0x104   : > { %3830 = vst [vmem:[#allocation9_spill] sm:$0xff] %v2499_v53  ;;  %3831 = vst [vmem:[#allocation10_spill] sm:$0xff] %v2503_v55  ;;  %v2031_v56 = vpack.c.bf16 %v2499_v53, %v2491_v51  ;;  %v2507_v57 = vpop.f32.mrb[14].mxu1  ;;  %v2020_v58 = vpack.c.bf16 %v2503_v55, %v2503_v55  ;;  %v2511_v59 = vpop.f32.mrb[14].mxu0 }
 0x105   : > { %3832 = vst [vmem:[#allocation11_spill] sm:$0xff] %v2507_v57  ;;  %3833 = vst [vmem:[#allocation12_spill] sm:$0xff] %v2511_v59  ;;  %v2513_v60 = vpop.f32.mrb[15].mxu1  ;;  %v2029_v61 = vpack.c.bf16 %v2511_v59, %v2511_v59  ;;  %v2519_v62 = vpop.f32.mrb[15].mxu0 }
 0x106   : > { %695 = vst.msk [vmem:[%s2387_s22 + $0x38] sm:$0xf] %vm688_vm1, %v2026_v54  ;;  %3834 = vst [vmem:[#allocation13_spill] sm:$0xff] %v2519_v62  ;;  %v2034_v63 = vpack.c.bf16 %v2513_v60, %v2507_v57  ;;  %v2023_v0 = vpack.c.bf16 %v2519_v62, %v2519_v62  ;;  %v2624_v54 = vunpack.c.2.s8 %v712_v31 }
 0x107   : > { %700 = vst [vmem:[%s2387_s22 + $0x58] sm:$0xff] %v2031_v56  ;;  %689 = vst.msk [vmem:[%s2387_s22 + $0x10] sm:$0xf] %vm688_vm1, %v2020_v58  ;;  %1130 = vrot.lane.b32.xlu1 %v2469_v44, %s2294_s23  ;;  %1484 = vrot.lane.b32.xlu0 %v2475_v47, %s2294_s23  ;;  %v2626_v56 = vunpack.c.0.s8 %v713_v20  ;;  %v2628_v58 = vunpack.c.3.s8 %v712_v31 }
 0x108   : > { %698 = vst.msk [vmem:[%s2387_s22 + $0x4c] sm:$0xf] %vm688_vm1, %v2029_v61  ;;  %703 = vst [vmem:[%s2387_s22 + $0x6c] sm:$0xff] %v2034_v63  ;;  %v2630_v61 = vunpack.c.1.s8 %v713_v20  ;;  %v2633_v63 = vunpack.c.1.s8 %v714_v45 }
 0x109   : > { %692 = vst.msk [vmem:[%s2387_s22 + $0x24] sm:$0xf] %vm688_vm1, %v2023_v0  ;;  %v2635_v0 = vunpack.c.0.s8 %v714_v45 }
 0x10a   : > { %v2537_v1 = vpop.f32.mrb[16].mxu1  ;;  %v2539_v2 = vpop.f32.mrb[16].mxu0 }
 0x10b   : > { %3835 = vst [vmem:[#allocation14_spill] sm:$0xff] %v2537_v1  ;;  %3836 = vst [vmem:[#allocation15_spill] sm:$0xff] %v2539_v2  ;;  %1132 = vrot.lane.b32.xlu0 %v2491_v51, %s2294_s23  ;;  %749 = vrot.lane.b32.xlu1 %v2473_v46, %s2294_s23  ;;  %v2545_v3 = vpop.f32.mrb[17].mxu1  ;;  %v2547_v4 = vpop.f32.mrb[17].mxu0  ;;  %v2038_v9 = vpack.c.bf16 %v2539_v2, %v2539_v2 }
 0x10c   : > { %3837 = vst [vmem:[#allocation16_spill] sm:$0xff] %v2545_v3  ;;  %3838 = vst [vmem:[#allocation17_spill] sm:$0xff] %v2547_v4  ;;  %v2037_v5 = vpack.c.bf16 %v2545_v3, %v2537_v1  ;;  %v2551_v6 = vpop.f32.mrb[18].mxu1  ;;  %v2553_v7 = vpop.f32.mrb[18].mxu0  ;;  %v2032_v10 = vpack.c.bf16 %v2547_v4, %v2547_v4 }
 0x10d   : > { %3839 = vst [vmem:[#allocation18_spill] sm:$0xff] %v2551_v6  ;;  %3840 = vst [vmem:[#allocation19_spill] sm:$0xff] %v2553_v7  ;;  %v2555_v8 = vpop.f32.mrb[19].mxu1  ;;  %v2561_v11 = vpop.f32.mrb[19].mxu0  ;;  %v2041_v13 = vpack.c.bf16 %v2553_v7, %v2553_v7  ;;  %v956_v7 = vsel %vm948_vm8, %v2399_v21, 0.0 }
 0x10e   : > { %3841 = vst [vmem:[#allocation20_spill] sm:$0xff] %v2555_v8  ;;  %3842 = vst [vmem:[#allocation21_spill] sm:$0xff] %v2561_v11  ;;  %v2040_v12 = vpack.c.bf16 %v2555_v8, %v2551_v6  ;;  %v2035_v14 = vpack.c.bf16 %v2561_v11, %v2561_v11 }
 0x10f   : > { %706 = vst [vmem:[%s2387_s22 + $0x80] sm:$0xff] %v2037_v5  ;;  %1488 = vrot.lane.b32.xlu0 %v2513_v60, %s2294_s23  ;;  %1486 = vrot.lane.b32.xlu1 %v2499_v53, %s2294_s23  ;;  %707 = vst.msk [vmem:[%s2387_s22 + $0x88] sm:$0xf] %vm688_vm1, %v2038_v9  ;;  %v2637_v5 = vunpack.c.2.s8 %v714_v45  ;;  %v2642_v9 = vunpack.c.3.s8 %v714_v45  ;;  %v962_v45 = vsel %vm954_vm4, %v2401_v22, 0.0 }
 0x110   : > { %701 = vst.msk [vmem:[%s2387_s22 + $0x60] sm:$0xf] %vm688_vm1, %v2032_v10  ;;  %709 = vst [vmem:[%s2387_s22 + $0x94] sm:$0xff] %v2040_v12  ;;  %v955_v12 = vsel %vm947_vm2, %v2380_v15, 0.0 }
 0x111   : > { %710 = vst.msk [vmem:[%s2387_s22 + $0x9c] sm:$0xf] %vm688_vm1, %v2041_v13  ;;  %704 = vst.msk [vmem:[%s2387_s22 + $0x74] sm:$0xf] %vm688_vm1, %v2035_v14  ;;  %v995_v13 = vsel %vm987_vm3, %v2393_v18, 0.0  ;;  %v961_v14 = vsel %vm953_vm6, %v2382_v16, 0.0 }
 0x112   : > { %3845 = vst [vmem:[#allocation24_spill] sm:$0xff] %v2637_v5  ;;  %3846 = vst [vmem:[#allocation25_spill] sm:$0xff] %v2642_v9  ;;  %vm965_vm1 = vcmp.eq.s32.totalorder %v2605_v38, 1  ;;  %v2757_v9 = vsel %vm949_vm10, %v2427_v29, 0.0 }
 0x113   : > { %1136 = vrot.lane.b32.xlu0 %v2537_v1, %s2294_s23  ;;  %1134 = vrot.lane.b32.xlu1 %v2507_v57, %s2294_s23  ;;  %v996_v57 = vsel %vm988_vm9, %v2405_v23, 0.0 }
 0x117   : > { %1138 = vrot.lane.b32.xlu0 %v2551_v6, %s2294_s23  ;;  %1490 = vrot.lane.b32.xlu1 %v2545_v3, %s2294_s23  ;;  %v1002_v6 = vsel %vm994_vm5, %v2407_v24, 0.0  ;;  %v2674_v3 = vsel %vm947_vm2, %v2393_v18, 0.0  ;;  %vm1703_vm2 = vcmp.eq.s32.totalorder %v2618_v49, 1 }
 0x11b   : > { %1492 = vrot.lane.b32.xlu1 %v2555_v8, %s2294_s23 }
 0x15d   : > { %v740_v10 = vpop.permute.xlu0 %739 }
 0x15e   : > { %v763_v20 = vmax.f32 %v2380_v15, %v740_v10  ;;  %v971_v31 = vsel %vm963_vm13, %v740_v10, 0.0  ;;  %v2680_v10 = vsel %vm953_vm6, %v2389_v17, 0.0  ;;  %vm951_vm6 = vcmp.eq.s32.totalorder %v2626_v56, 0 }
 0x15f   : > { %v979_v2 = vadd.f32 %v971_v31, %v955_v12  ;;  %v754_v8 = vpop.permute.xlu1 %753  ;;  %3847 = vst [vmem:[#allocation26_spill] sm:$0xff] %v2680_v10  ;;  %v1333_v10 = vsel %vm948_vm8, %v2405_v23, 0.0  ;;  %vm3854_vm8 = vcmp.eq.s32.totalorder %v2603_v37, 1 }
 0x160   : > { %v2683_v1 = vmax.f32 %v763_v20, %v2393_v18  ;;  %v770_v12 = vmax.f32 %v2401_v22, %v754_v8  ;;  %v978_v31 = vsel %vm3753_vm14, %v754_v8, 0.0  ;;  %v2699_v20 = vsel %vm954_vm4, %v2407_v24, 0.0 }
 0x161   : > { %v2691_v4 = vadd.f32 %v995_v13, %v979_v2  ;;  %v986_v11 = vadd.f32 %v978_v31, %v962_v45  ;;  %v752_v53 = vpop.permute.xlu0 %751  ;;  %3850 = vst [vmem:[#allocation29_spill] sm:$0xff] %v2699_v20  ;;  %v957_v8 = vsel %vm949_vm10, %v2419_v27, 0.0  ;;  %vm3852_vm4 = vcmp.eq.s32.totalorder %v2607_v43, 0  ;;  %vm3856_vm10 = vmmov %vm3854_vm8 }
 0x162   : > { %3848 = vst [vmem:[#allocation27_spill] sm:$0xff] %v2683_v1  ;;  %v2706_v2 = vmax.f32 %v770_v12, %v2407_v24  ;;  %v769_v13 = vmax.f32 %v2382_v16, %v752_v53  ;;  %811 = vrot.lane.b32.xlu0 %v2683_v1, %s2294_s23  ;;  %v977_v20 = vsel %vm969_vm15, %v752_v53, 0.0  ;;  %v997_v12 = vsel %vm989_vm11, %v2427_v29, 0.0 }
 0x163   : > { %3849 = vst [vmem:[#allocation28_spill] sm:$0xff] %v2691_v4  ;;  %v2713_v31 = vadd.f32 %v1002_v6, %v986_v11  ;;  %v2730_v6 = vsel %vm987_vm3, %v2421_v28, 0.0  ;;  %v985_v11 = vadd.f32 %v977_v20, %v961_v14  ;;  %vm1727_vm3 = vcmp.eq.s32.totalorder %v2618_v49, 2 }
 0x164   : > { %v2725_v15 = vmax.f32 %v769_v13, %v2389_v17  ;;  %v2741_v13 = vsel %vm3852_vm4, %v2429_v30, 0.0  ;;  %v1357_v53 = vsel %vm988_vm9, %v2437_v34, 0.0  ;;  %vm1702_vm4 = vcmp.eq.s32.totalorder %v2607_v43, 1 }
 0x165   : > { %3851 = vst [vmem:[#allocation30_spill] sm:$0xff] %v2713_v31  ;;  %v742_v45 = vpop.permute.xlu0 %741  ;;  %v744_v4 = vpop.permute.xlu1 %743  ;;  %v2759_v31 = vadd.f32 %v1001_v19, %v985_v11  ;;  %vm1726_vm14 = vcmp.eq.s32.totalorder %v2607_v43, 2  ;;  %v1695_v19 = vsel %vm1687_vm0, %v2441_v36, 0.0  ;;  %v2775_v11 = vsel %vm950_vm12, %v2433_v32, 0.0 }
 0x166   : > { %823 = vrot.lane.b32.xlu0 %v2725_v15, %s2294_s23  ;;  %v764_v1 = vmax.f32 %v2399_v21, %v742_v45  ;;  %v972_v14 = vsel %vm3854_vm8, %v742_v45, 0.0  ;;  %v765_v20 = vmax.f32 %v2419_v27, %v744_v4  ;;  %v973_v16 = vsel %vm965_vm1, %v744_v4, 0.0 }
 0x167   : > { %3853 = vst [vmem:[#allocation31_spill] sm:$0xff] %v2759_v31  ;;  %v980_v22 = vadd.f32 %v972_v14, %v956_v7  ;;  %vm1688_vm9 = vcmp.eq.s32.totalorder %v2624_v54, 0  ;;  %v981_v4 = vadd.f32 %v973_v16, %v957_v8  ;;  %v2794_v45 = vsel %vm990_vm7, %v2439_v35, 0.0 }
 0x168   : > { %v2781_v24 = vmax.f32 %v764_v1, %v2405_v23  ;;  %v2784_v7 = vmax.f32 %v765_v20, %v2427_v29  ;;  %vm991_vm0 = vcmp.eq.s32.totalorder %v2626_v56, 2  ;;  %vm966_vm8 = vcmp.eq.s32.totalorder %v2620_v50, 1 }
 0x169   : > { %v1127_v14 = vpop.permute.xlu0 %1126  ;;  %v1125_v26 = vpop.permute.xlu1 %1124  ;;  %v2786_v33 = vadd.f32 %v996_v57, %v980_v22  ;;  %v2809_v8 = vadd.f32 %v997_v12, %v981_v4  ;;  %v1358_v12 = vsel %vm989_vm11, %v2455_v39, 0.0  ;;  %vm1704_vm11 = vcmp.eq.s32.totalorder %v2624_v54, 1 }
 0x16a   : > { %v1149_v17 = vmax.f32 %v2405_v23, %v1127_v14  ;;  %v1341_v5 = vsel %vm3856_vm10, %v1127_v14, 0.0  ;;  %815 = vrot.lane.b32.xlu0 %v2784_v7, %s2294_s23  ;;  %813 = vrot.lane.b32.xlu1 %v2781_v24, %s2294_s23  ;;  %v1148_v22 = vmax.f32 %v2393_v18, %v1125_v26  ;;  %v1340_v1 = vsel %vm963_vm13, %v1125_v26, 0.0 }
 0x16b   : > { %3855 = vst [vmem:[#allocation32_spill] sm:$0xff] %v2786_v33  ;;  %3857 = vst [vmem:[#allocation33_spill] sm:$0xff] %v2809_v8  ;;  %v1349_v14 = vadd.f32 %v1341_v5, %v1333_v10  ;;  %vm952_vm10 = vcmp.eq.s32.totalorder %v2630_v61, 0  ;;  %v1348_v37 = vadd.f32 %v1340_v1, %v2674_v3  ;;  %vm992_vm13 = vcmp.eq.s32.totalorder %v2630_v61, 2 }
 0x16c   : > { %v2812_v20 = vmax.f32 %v1149_v17, %v2437_v34  ;;  %v2826_v17 = vsel %vm950_vm12, %v2439_v35, 0.0  ;;  %v2838_v4 = vmax.f32 %v1148_v22, %v2421_v28  ;;  %vm1689_vm12 = vcmp.eq.s32.totalorder %v2628_v58, 0 }
 0x16d   : > { %v1481_v57 = vpop.permute.xlu0 %1480  ;;  %v1479_v16 = vpop.permute.xlu1 %1478  ;;  %v2835_v10 = vadd.f32 %v1357_v53, %v1349_v14  ;;  %v1735_v3 = vsel %vm1727_vm3, %v2519_v62, 0.0  ;;  %v2859_v1 = vsel %vm951_vm6, %v2457_v40, 0.0  ;;  %v1734_v8 = vsel %vm1726_vm14, %v2503_v55, 0.0 }
 0x16e   : > { %v1503_v33 = vmax.f32 %v2441_v36, %v1481_v57  ;;  %1198 = vrot.lane.b32.xlu0 %v2812_v20, %s2294_s23  ;;  %v1711_v22 = vsel %vm1703_vm2, %v1481_v57, 0.0  ;;  %825 = vrot.lane.b32.xlu1 %v2706_v2, %s2294_s23  ;;  %v2866_v57 = vadd.f32 %v2730_v6, %v1348_v37  ;;  %v1502_v49 = vmax.f32 %v2429_v30, %v1479_v16 }
 0x16f   : > { %3858 = vst [vmem:[#allocation34_spill] sm:$0xff] %v2835_v10  ;;  %v1719_v5 = vadd.f32 %v1711_v22, %v1695_v19  ;;  %v1710_v10 = vsel %vm1702_vm4, %v1479_v16, 0.0  ;;  %vm1728_vm2 = vcmp.eq.s32.totalorder %v2624_v54, 2  ;;  %vm967_vm3 = vcmp.eq.s32.totalorder %v2626_v56, 1 }
 0x170   : > { %3859 = vst [vmem:[#allocation35_spill] sm:$0xff] %v2866_v57  ;;  %v2875_v14 = vmax.f32 %v1503_v33, %v2519_v62  ;;  %v1718_v19 = vadd.f32 %v1710_v10, %v2741_v13  ;;  %v1696_v16 = vsel %vm1688_vm9, %v2463_v41, 0.0  ;;  %v2888_v43 = vmax.f32 %v1502_v49, %v2503_v55 }
 0x171   : > { %v1129_v25 = vpop.permute.xlu0 %1128  ;;  %v746_v26 = vpop.permute.xlu1 %745  ;;  %v2882_v37 = vadd.f32 %v1735_v3, %v1719_v5  ;;  %v999_v38 = vsel %vm991_vm0, %v2465_v42, 0.0  ;;  %vm1729_vm14 = vcmp.eq.s32.totalorder %v2628_v58, 2  ;;  %v1697_v55 = vsel %vm1689_vm12, %v2475_v47, 0.0 }
 0x172   : > { %v1150_v22 = vmax.f32 %v2427_v29, %v1129_v25  ;;  %v1342_v53 = vsel %vm965_vm1, %v1129_v25, 0.0  ;;  %1196 = vrot.lane.b32.xlu1 %v2838_v4, %s2294_s23  ;;  %1552 = vrot.lane.b32.xlu0 %v2875_v14, %s2294_s23  ;;  %v2899_v13 = vadd.f32 %v1734_v8, %v1718_v19  ;;  %v766_v8 = vmax.f32 %v2433_v32, %v746_v26 }
 0x173   : > { %3860 = vst [vmem:[#allocation36_spill] sm:$0xff] %v2882_v37  ;;  %v1350_v10 = vadd.f32 %v1342_v53, %v2757_v9  ;;  %v1359_v9 = vsel %vm990_vm7, %v2469_v44, 0.0  ;;  %v974_v5 = vsel %vm966_vm8, %v746_v26, 0.0  ;;  %vm1691_vm1 = vcmp.eq.s32.totalorder %v2633_v63, 0 }
 0x174   : > { %3861 = vst [vmem:[#allocation37_spill] sm:$0xff] %v2899_v13  ;;  %v2911_v6 = vmax.f32 %v1150_v22, %v2455_v39  ;;  %v2941_v26 = vsel %vm952_vm10, %v2473_v46, 0.0  ;;  %v2946_v53 = vmax.f32 %v766_v8, %v2439_v35  ;;  %v982_v22 = vadd.f32 %v974_v5, %v2775_v11 }
 0x175   : > { %v1483_v3 = vpop.permute.xlu1 %1482  ;;  %v748_v49 = vpop.permute.xlu0 %747  ;;  %v2919_v19 = vadd.f32 %v1358_v12, %v1350_v10  ;;  %v2936_v12 = vsel %vm951_vm6, %v2465_v42, 0.0  ;;  %v2961_v8 = vsel %vm992_vm13, %v2477_v48, 0.0  ;;  %v2982_v11 = vsel %vm952_vm10, %v2477_v48, 0.0 }
 0x176   : > { %3862 = vst [vmem:[#allocation38_spill] sm:$0xff] %v2911_v6  ;;  %v1504_v33 = vmax.f32 %v2463_v41, %v1483_v3  ;;  %1550 = vrot.lane.b32.xlu1 %v2888_v43, %s2294_s23  ;;  %1200 = vrot.lane.b32.xlu0 %v2911_v6, %s2294_s23  ;;  %v1712_v57 = vsel %vm1704_vm11, %v1483_v3, 0.0  ;;  %v767_v31 = vmax.f32 %v2457_v40, %v748_v49  ;;  %vm1705_vm7 = vcmp.eq.s32.totalorder %v2628_v58, 1 }
 0x177   : > { %3863 = vst [vmem:[#allocation39_spill] sm:$0xff] %v2919_v19  ;;  %v2968_v5 = vadd.f32 %v2794_v45, %v982_v22  ;;  %v1720_v19 = vadd.f32 %v1712_v57, %v1696_v16  ;;  %v1736_v22 = vsel %vm1728_vm2, %v2493_v52, 0.0  ;;  %v975_v57 = vsel %vm967_vm3, %v748_v49, 0.0 }
 0x178   : > { %v2950_v25 = vmax.f32 %v1504_v33, %v2493_v52  ;;  %v2975_v6 = vmax.f32 %v767_v31, %v2465_v42  ;;  %v983_v54 = vadd.f32 %v975_v57, %v2859_v1  ;;  %vm1690_vm6 = vcmp.eq.s32.totalorder %v2635_v0, 0 }
 0x179   : > { %v1131_v13 = vpop.permute.xlu1 %1130  ;;  %v1485_v37 = vpop.permute.xlu0 %1484  ;;  %3864 = vst [vmem:[#allocation40_spill] sm:$0xff] %v2968_v5  ;;  %v2992_v10 = vadd.f32 %v1736_v22, %v1720_v19  ;;  %v1360_v22 = vsel %vm991_vm0, %v2491_v51, 0.0  ;;  %v1737_v1 = vsel %vm1729_vm14, %v2511_v59, 0.0  ;;  %vm968_vm4 = vcmp.eq.s32.totalorder %v2630_v61, 1 }
 0x17a   : > { %817 = vrot.lane.b32.xlu1 %v2946_v53, %s2294_s23  ;;  %v1151_v31 = vmax.f32 %v2439_v35, %v1131_v13  ;;  %819 = vrot.lane.b32.xlu0 %v2975_v6, %s2294_s23  ;;  %v1343_v19 = vsel %vm966_vm8, %v1131_v13, 0.0  ;;  %v3020_v50 = vadd.f32 %v999_v38, %v983_v54  ;;  %v1713_v45 = vsel %vm1705_vm7, %v1485_v37, 0.0 }
 0x17b   : > { %3865 = vst [vmem:[#allocation41_spill] sm:$0xff] %v2992_v10  ;;  %v1351_v33 = vadd.f32 %v1343_v19, %v2826_v17  ;;  %v1699_v38 = vsel %vm1691_vm1, %v2513_v60, 0.0  ;;  %v1721_v57 = vadd.f32 %v1713_v45, %v1697_v55  ;;  %vm1707_vm9 = vcmp.eq.s32.totalorder %v2633_v63, 1 }
 0x17c   : > { %v3003_v49 = vmax.f32 %v1151_v31, %v2469_v44  ;;  %3867 = vst [vmem:[#allocation43_spill] sm:$0xff] %v3020_v50  ;;  %v1505_v31 = vmax.f32 %v2475_v47, %v1485_v37  ;;  %vm1731_vm8 = vcmp.eq.s32.totalorder %v2633_v63, 2  ;;  %vm1730_vm10 = vcmp.eq.s32.totalorder %v2635_v0, 2 }
 0x17d   : > { %v1133_v16 = vpop.permute.xlu0 %1132  ;;  %v750_v3 = vpop.permute.xlu1 %749  ;;  %v3027_v19 = vadd.f32 %v1359_v9, %v1351_v33  ;;  %v3056_v58 = vadd.f32 %v1737_v1, %v1721_v57  ;;  %vm1706_vm12 = vcmp.eq.s32.totalorder %v2635_v0, 1  ;;  %v3876_v1 = vld [vmem:[#allocation9_spill] sm:$0xff]  ;;  %vm1027_vm1 = vcmask 523264  }
 0x17e   : > { %3866 = vst [vmem:[#allocation42_spill] sm:$0xff] %v3003_v49  ;;  %1554 = vrot.lane.b32.xlu1 %v2950_v25, %s2294_s23  ;;  %v1152_v62 = vmax.f32 %v2465_v42, %v1133_v16  ;;  %v3038_v13 = vmax.f32 %v1505_v31, %v2511_v59  ;;  %v1344_v33 = vsel %vm967_vm3, %v1133_v16, 0.0  ;;  %v768_v10 = vmax.f32 %v2473_v46, %v750_v3  ;;  %v3871_v31 = vld [vmem:[#allocation24_spill] sm:$0xff] }
 0x17f   : > { %3868 = vst [vmem:[#allocation44_spill] sm:$0xff] %v3027_v19  ;;  %vm1692_vm0 = vcmp.eq.s32.totalorder %v3871_v31, 0  ;;  %3872 = vst [vmem:[#allocation24_spill] sm:$0xff] %v3056_v58  ;;  %v1352_v16 = vadd.f32 %v1344_v33, %v2936_v12  ;;  %v976_v57 = vsel %vm968_vm4, %v750_v3, 0.0  ;;  %vm1708_vm2 = vcmp.eq.s32.totalorder %v3871_v31, 1 }
 0x180   : > { %3869 = vst [vmem:[#allocation45_spill] sm:$0xff] %v3038_v13  ;;  %v3044_v37 = vmax.f32 %v1152_v62, %v2491_v51  ;;  %1556 = vrot.lane.b32.xlu0 %v3038_v13, %s2294_s23  ;;  %v3067_v54 = vmax.f32 %v768_v10, %v2477_v48  ;;  %v3874_v62 = vld [vmem:[#allocation25_spill] sm:$0xff]  ;;  %v984_v3 = vadd.f32 %v976_v57, %v2941_v26  ;;  %v1698_v26 = vsel %vm1690_vm6, %v3876_v1, 0.0 }
 0x181   : > { %v1487_v17 = vpop.permute.xlu1 %1486  ;;  %v1489_v9 = vpop.permute.xlu0 %1488  ;;  %vm1693_vm11 = vcmp.eq.s32.totalorder %v3874_v62, 0  ;;  %v3076_v19 = vadd.f32 %v1360_v22, %v1352_v16  ;;  %v3877_v22 = vld [vmem:[#allocation21_spill] sm:$0xff]  ;;  %vm1732_vm3 = vcmp.eq.s32.totalorder %v3871_v31, 2  ;;  %vm1733_vm14 = vcmp.eq.s32.totalorder %v3874_v62, 2 }
 0x182   : > { %3870 = vst [vmem:[#allocation46_spill] sm:$0xff] %v3044_v37  ;;  %1202 = vrot.lane.b32.xlu1 %v3003_v49, %s2294_s23  ;;  %3873 = vst [vmem:[#allocation47_spill] sm:$0xff] %v3067_v54  ;;  %v1507_v45 = vmax.f32 %v2513_v60, %v1489_v9  ;;  %v1715_v33 = vsel %vm1707_vm9, %v1489_v9, 0.0  ;;  %v1506_v56 = vmax.f32 %v3876_v1, %v1487_v17  ;;  %v1739_v16 = vsel %vm1731_vm8, %v3877_v22, 0.0  ;;  %v3878_v57 = vld [vmem:[#allocation17_spill] sm:$0xff] }
 0x183   : > { %3875 = vst [vmem:[#allocation25_spill] sm:$0xff] %v3076_v19  ;;  %v1723_v58 = vadd.f32 %v1715_v33, %v1699_v38  ;;  %v1738_v9 = vsel %vm1730_vm10, %v3878_v57, 0.0  ;;  %v3103_v50 = vadd.f32 %v2961_v8, %v984_v3  ;;  %v1714_v5 = vsel %vm1706_vm12, %v1487_v17, 0.0  ;;  %v3883_v33 = vld [vmem:[#allocation4_spill] sm:$0xff]  ;;  %v3886_v3 = vld [vmem:[#allocation14_spill] sm:$0xff] }
 0x184   : > { %1204 = vrot.lane.b32.xlu0 %v3044_v37, %s2294_s23  ;;  %v3106_v63 = vmax.f32 %v1506_v56, %v3878_v57  ;;  %v3109_v13 = vmax.f32 %v1507_v45, %v3877_v22  ;;  %v1722_v10 = vadd.f32 %v1714_v5, %v1698_v26  ;;  %v3884_v37 = vld [vmem:[#allocation11_spill] sm:$0xff]  ;;  %v3890_v5 = vld [vmem:[#allocation26_spill] sm:$0xff]  ;;  %vm1388_vm7 = vcmask 1048064  }
 0x185   : > { %v1135_v55 = vpop.permute.xlu1 %1134  ;;  %v1137_v12 = vpop.permute.xlu0 %1136  ;;  %3879 = vst [vmem:[#allocation9_spill] sm:$0xff] %v3103_v50  ;;  %v3111_v38 = vadd.f32 %v1739_v16, %v1723_v58  ;;  %v1361_v0 = vsel %vm992_vm13, %v3884_v37, 0.0  ;;  %v3888_v26 = vld [vmem:[#allocation23_spill] sm:$0xff]  ;;  %v3891_v50 = vld [vmem:[#allocation16_spill] sm:$0xff]  ;;  %v3894_v22 = vld [vmem:[#allocation18_spill] sm:$0xff]  ;;  %vm1100_vm6 = vcmask 1041409  }
 0x186   : > { %821 = vrot.lane.b32.xlu1 %v3067_v54, %s2294_s23  ;;  %3880 = vst [vmem:[#allocation48_spill] sm:$0xff] %v3106_v63  ;;  %3881 = vst [vmem:[#allocation49_spill] sm:$0xff] %v3109_v13  ;;  %v1154_v19 = vmax.f32 %v3883_v33, %v1137_v12  ;;  %v3127_v58 = vadd.f32 %v1738_v9, %v1722_v10  ;;  %v1346_v8 = vsel %vm969_vm15, %v1137_v12, 0.0  ;;  %vm3889_vm13 = vcmp.eq.s32.totalorder %v3888_v26, 2  ;;  %v3895_v57 = vld [vmem:[#allocation22_spill] sm:$0xff] }
 0x187   : > { %3882 = vst [vmem:[#allocation50_spill] sm:$0xff] %v3111_v38  ;;  %v1362_v45 = vsel %vm3889_vm13, %v3886_v3, 0.0  ;;  %v1354_v17 = vadd.f32 %v1346_v8, %v3890_v5  ;;  %v1153_v10 = vmax.f32 %v2477_v48, %v1135_v55  ;;  %v1345_v26 = vsel %vm968_vm4, %v1135_v55, 0.0  ;;  %v3896_v12 = vld [vmem:[#allocation6_spill] sm:$0xff]  ;;  %v3898_v55 = vld [vmem:[#allocation20_spill] sm:$0xff] }
 0x188   : > { %1560 = vrot.lane.b32.xlu0 %v3109_v13, %s2294_s23  ;;  %3885 = vst [vmem:[#allocation11_spill] sm:$0xff] %v3127_v58  ;;  %v3132_v16 = vmax.f32 %v1154_v19, %v3886_v3  ;;  %v1700_v19 = vsel %vm1692_vm0, %v3891_v50, 0.0  ;;  %v1353_v13 = vadd.f32 %v1345_v26, %v2982_v11  ;;  %v1363_v56 = vsel %vm994_vm5, %v3894_v22, 0.0 }
 0x189   : > { %v1491_v59 = vpop.permute.xlu1 %1490  ;;  %v1139_v9 = vpop.permute.xlu0 %1138  ;;  %v3154_v8 = vadd.f32 %v1362_v45, %v1354_v17  ;;  %v3157_v5 = vmax.f32 %v1153_v10, %v3884_v37  ;;  %vm3897_vm15 = vcmp.eq.s32.totalorder %v3895_v57, 1  ;;  %v1701_v17 = vsel %vm1693_vm11, %v3898_v55, 0.0 }
 0x18a   : > { %3887 = vst [vmem:[#allocation14_spill] sm:$0xff] %v3132_v16  ;;  %1558 = vrot.lane.b32.xlu1 %v3106_v63, %s2294_s23  ;;  %v1155_v58 = vmax.f32 %v3896_v12, %v1139_v9  ;;  %v1347_v61 = vsel %vm3897_vm15, %v1139_v9, 0.0  ;;  %v3178_v38 = vadd.f32 %v1361_v0, %v1353_v13  ;;  %v3901_v9 = vld [vmem:[#allocation29_spill] sm:$0xff]  ;;  %v1508_v49 = vmax.f32 %v3891_v50, %v1491_v59 }
 0x18b   : > { %3892 = vst [vmem:[#allocation23_spill] sm:$0xff] %v3154_v8  ;;  %3893 = vst [vmem:[#allocation26_spill] sm:$0xff] %v3157_v5  ;;  %v1355_v54 = vadd.f32 %v1347_v61, %v3901_v9  ;;  %vm1709_vm5 = vcmp.eq.s32.totalorder %v3874_v62, 1  ;;  %v1716_v10 = vsel %vm1708_vm2, %v1491_v59, 0.0  ;;  %v3903_v61 = vld [vmem:[#allocation15_spill] sm:$0xff]  ;;  %vm1102_vm4 = vcmask 1042434  }
 0x18c   : > { %1208 = vrot.lane.b32.xlu0 %v3132_v16, %s2294_s23  ;;  %3899 = vst [vmem:[#allocation18_spill] sm:$0xff] %v3178_v38  ;;  %v3183_v57 = vmax.f32 %v1155_v58, %v3894_v22  ;;  %v3199_v9 = vmax.f32 %v1508_v49, %v3903_v61  ;;  %v1724_v11 = vadd.f32 %v1716_v10, %v1700_v19  ;;  %v3905_v59 = vld [vmem:[#allocation19_spill] sm:$0xff]  ;;  %vm1104_vm9 = vcmask 1043459  }
 0x18d   : > { %v1493_v45 = vpop.permute.xlu1 %1492  ;;  %v3196_v26 = vadd.f32 %v1363_v56, %v1355_v54  ;;  %v1740_v56 = vsel %vm1732_vm3, %v3903_v61, 0.0  ;;  %v3910_v49 = vld [vmem:[#allocation3_spill] sm:$0xff]  ;;  %vm1106_vm0 = vcmask 1044484   ;;  %vm1108_vm8 = vcmask 1045509  }
 0x18e   : > { %1206 = vrot.lane.b32.xlu1 %v3157_v5, %s2294_s23  ;;  %3900 = vst [vmem:[#allocation22_spill] sm:$0xff] %v3183_v57  ;;  %v1509_v13 = vmax.f32 %v3898_v55, %v1493_v45  ;;  %3904 = vst [vmem:[#allocation15_spill] sm:$0xff] %v3199_v9  ;;  %v1717_v38 = vsel %vm1709_vm5, %v1493_v45, 0.0  ;;  %v3216_v19 = vadd.f32 %v1740_v56, %v1724_v11  ;;  %v3909_v45 = vld [vmem:[#allocation2_spill] sm:$0xff]  ;;  %vm1110_vm10 = vcmask 1046534  }
 0x18f   : > { %3902 = vst [vmem:[#allocation29_spill] sm:$0xff] %v3196_v26  ;;  %v1725_v10 = vadd.f32 %v1717_v38, %v1701_v17  ;;  %vm1112_vm11 = vcmask 1047559  }
 0x190   : > { %1210 = vrot.lane.b32.xlu0 %v3183_v57, %s2294_s23  ;;  %v3205_v31 = vmax.f32 %v1509_v13, %v3905_v59  ;;  %3907 = vst [vmem:[#allocation52_spill] sm:$0xff] %v3216_v19  ;;  %v1741_v13 = vsel %vm1733_vm14, %v3905_v59, 0.0 }
 0x191   : > { %v3225_v54 = vadd.f32 %v1741_v13, %v1725_v10 }
 0x192   : > { %3906 = vst [vmem:[#allocation51_spill] sm:$0xff] %v3205_v31  ;;  %1562 = vrot.lane.b32.xlu1 %v3199_v9, %s2294_s23 }
 0x193   : > { %3908 = vst [vmem:[#allocation53_spill] sm:$0xff] %v3225_v54 }
 0x196   : > { %1564 = vrot.lane.b32.xlu1 %v3205_v31, %s2294_s23 }
 0x1d4   : > { %v812_v17 = vpop.permute.xlu0 %811 }
 0x1d5   : > { %v835_v0 = vsub.f32 %v3909_v45, %v812_v17 }
 0x1d7   : > { %v843_v10 = vmul.f32 1.442695, %v835_v0 }
 0x1d8   : > { %v824_v13 = vpop.permute.xlu0 %823 }
 0x1d9   : > { %2093 = vpow2.f32 %v843_v10  ;;  %v841_v58 = vsub.f32 %v3910_v49, %v824_v13  ;;  %v3911_v10 = vld [vmem:[#allocation5_spill] sm:$0xff] }
 0x1db   : > { %v855_v19 = vmul.f32 1.442695, %v841_v58 }
 0x1dc   : > { %v816_v11 = vpop.permute.xlu0 %815  ;;  %v814_v56 = vpop.permute.xlu1 %813 }
 0x1dd   : > { %2095 = vpow2.f32 %v855_v19  ;;  %v837_v54 = vsub.f32 %v2419_v27, %v816_v11  ;;  %v836_v26 = vsub.f32 %v2399_v21, %v814_v56 }
 0x1df   : > { %v847_v62 = vmul.f32 1.442695, %v837_v54  ;;  %v845_v8 = vmul.f32 1.442695, %v836_v26 }
 0x1e0   : > { %v1199_v31 = vpop.permute.xlu0 %1198  ;;  %v826_v17 = vpop.permute.xlu1 %825 }
 0x1e1   : > { %2097 = vpow2.f32 %v847_v62  ;;  %v1221_v38 = vsub.f32 %v2437_v34, %v1199_v31  ;;  %v842_v59 = vsub.f32 %v3911_v10, %v826_v17 }
 0x1e2   : > { %2099 = vpow2.f32 %v845_v8 }
 0x1e3   : > { %v2094_v0 = vpop.eup %2093  ;;  %v1230_v13 = vmul.f32 1.442695, %v1221_v38  ;;  %v857_v58 = vmul.f32 1.442695, %v842_v59 }
 0x1e4   : > { %867 = vrot.lane.b32.xlu0 %v2094_v0, %s2294_s23  ;;  %v1197_v19 = vpop.permute.xlu1 %1196  ;;  %v1553_v11 = vpop.permute.xlu0 %1552 }
 0x1e5   : > { %2101 = vpow2.f32 %v1230_v13  ;;  %v1220_v26 = vsub.f32 %v2421_v28, %v1197_v19  ;;  %v1575_v54 = vsub.f32 %v2441_v36, %v1553_v11 }
 0x1e6   : > { %2103 = vpow2.f32 %v857_v58 }
 0x1e7   : > { %v2096_v27 = vpop.eup %2095  ;;  %v1228_v31 = vmul.f32 1.442695, %v1220_v26  ;;  %v1584_v62 = vmul.f32 1.442695, %v1575_v54 }
 0x1e8   : > { %879 = vrot.lane.b32.xlu0 %v2096_v27, %s2294_s23  ;;  %v1551_v8 = vpop.permute.xlu1 %1550  ;;  %v1201_v56 = vpop.permute.xlu0 %1200 }
 0x1e9   : > { %2105 = vpow2.f32 %v1228_v31  ;;  %v1574_v38 = vsub.f32 %v2429_v30, %v1551_v8  ;;  %v1222_v59 = vsub.f32 %v2455_v39, %v1201_v56 }
 0x1ea   : > { %2107 = vpow2.f32 %v1584_v62 }
 0x1eb   : > { %v2098_v17 = vpop.eup %2097  ;;  %v1582_v13 = vmul.f32 1.442695, %v1574_v38  ;;  %v1232_v58 = vmul.f32 1.442695, %v1222_v59 }
 0x1ec   : > { %v2100_v0 = vpop.eup %2099  ;;  %871 = vrot.lane.b32.xlu0 %v2098_v17, %s2294_s23  ;;  %v818_v19 = vpop.permute.xlu1 %817 }
 0x1ed   : > { %869 = vrot.lane.b32.xlu1 %v2100_v0, %s2294_s23  ;;  %2109 = vpow2.f32 %v1582_v13  ;;  %v838_v27 = vsub.f32 %v2433_v32, %v818_v19  ;;  %v820_v26 = vpop.permute.xlu0 %819 }
 0x1ee   : > { %2111 = vpow2.f32 %v1232_v58  ;;  %v839_v8 = vsub.f32 %v2457_v40, %v820_v26 }
 0x1ef   : > { %v2102_v11 = vpop.eup %2101  ;;  %v849_v31 = vmul.f32 1.442695, %v838_v27 }
 0x1f0   : > { %v2104_v54 = vpop.eup %2103  ;;  %1254 = vrot.lane.b32.xlu0 %v2102_v11, %s2294_s23  ;;  %v1555_v62 = vpop.permute.xlu1 %1554  ;;  %v851_v56 = vmul.f32 1.442695, %v839_v8 }
 0x1f1   : > { %881 = vrot.lane.b32.xlu1 %v2104_v54, %s2294_s23  ;;  %2113 = vpow2.f32 %v849_v31  ;;  %v1576_v38 = vsub.f32 %v2463_v41, %v1555_v62 }
 0x1f2   : > { %2115 = vpow2.f32 %v851_v56  ;;  %v1557_v58 = vpop.permute.xlu0 %1556 }
 0x1f3   : > { %v2106_v59 = vpop.eup %2105  ;;  %v1586_v17 = vmul.f32 1.442695, %v1576_v38  ;;  %v1577_v27 = vsub.f32 %v2475_v47, %v1557_v58 }
 0x1f4   : > { %v2108_v0 = vpop.eup %2107  ;;  %v1203_v13 = vpop.permute.xlu1 %1202 }
 0x1f5   : > { %1252 = vrot.lane.b32.xlu1 %v2106_v59, %s2294_s23  ;;  %2117 = vpow2.f32 %v1586_v17  ;;  %v1223_v19 = vsub.f32 %v2469_v44, %v1203_v13  ;;  %1608 = vrot.lane.b32.xlu0 %v2108_v0, %s2294_s23  ;;  %v1588_v31 = vmul.f32 1.442695, %v1577_v27 }
 0x1f6   : > { %v1205_v62 = vpop.permute.xlu0 %1204 }
 0x1f7   : > { %v2110_v11 = vpop.eup %2109  ;;  %v1234_v26 = vmul.f32 1.442695, %v1223_v19  ;;  %v1224_v38 = vsub.f32 %v2491_v51, %v1205_v62 }
 0x1f8   : > { %v2112_v54 = vpop.eup %2111  ;;  %v822_v8 = vpop.permute.xlu1 %821 }
 0x1f9   : > { %1606 = vrot.lane.b32.xlu1 %v2110_v11, %s2294_s23  ;;  %2119 = vpow2.f32 %v1234_v26  ;;  %v840_v56 = vsub.f32 %v2473_v46, %v822_v8  ;;  %1256 = vrot.lane.b32.xlu0 %v2112_v54, %s2294_s23  ;;  %v1236_v0 = vmul.f32 1.442695, %v1224_v38 }
 0x1fa   : > { %2121 = vpow2.f32 %v1588_v31  ;;  %v1561_v58 = vpop.permute.xlu0 %1560 }
 0x1fb   : > { %v2114_v59 = vpop.eup %2113  ;;  %v853_v17 = vmul.f32 1.442695, %v840_v56  ;;  %v1579_v19 = vsub.f32 %v2513_v60, %v1561_v58 }
 0x1fc   : > { %v2116_v13 = vpop.eup %2115  ;;  %v1559_v27 = vpop.permute.xlu1 %1558 }
 0x1fd   : > { %873 = vrot.lane.b32.xlu1 %v2114_v59, %s2294_s23  ;;  %2123 = vpow2.f32 %v853_v17  ;;  %875 = vrot.lane.b32.xlu0 %v2116_v13, %s2294_s23  ;;  %v1578_v26 = vsub.f32 %v3876_v1, %v1559_v27  ;;  %v1592_v54 = vmul.f32 1.442695, %v1579_v19 }
 0x1fe   : > { %2125 = vpow2.f32 %v1236_v0  ;;  %v1209_v8 = vpop.permute.xlu0 %1208 }
 0x1ff   : > { %v2118_v11 = vpop.eup %2117  ;;  %v1590_v31 = vmul.f32 1.442695, %v1578_v26  ;;  %2127 = vpow2.f32 %v1592_v54  ;;  %v1226_v62 = vsub.f32 %v3886_v3, %v1209_v8 }
 0x200   : > { %v1207_v38 = vpop.permute.xlu1 %1206 }
 0x201   : > { %1610 = vrot.lane.b32.xlu1 %v2118_v11, %s2294_s23  ;;  %2129 = vpow2.f32 %v1590_v31  ;;  %v1240_v17 = vmul.f32 1.442695, %v1226_v62  ;;  %v1225_v0 = vsub.f32 %v3884_v37, %v1207_v38 }
 0x202   : > { %v1211_v58 = vpop.permute.xlu0 %1210 }
 0x203   : > { %v2120_v56 = vpop.eup %2119  ;;  %2131 = vpow2.f32 %v1240_v17  ;;  %v1238_v13 = vmul.f32 1.442695, %v1225_v0  ;;  %v1227_v27 = vsub.f32 %v3894_v22, %v1211_v58 }
 0x204   : > { %v2122_v59 = vpop.eup %2121  ;;  %v1563_v26 = vpop.permute.xlu1 %1562 }
 0x205   : > { %1258 = vrot.lane.b32.xlu1 %v2120_v56, %s2294_s23  ;;  %1612 = vrot.lane.b32.xlu0 %v2122_v59, %s2294_s23  ;;  %2133 = vpow2.f32 %v1238_v13  ;;  %v1242_v54 = vmul.f32 1.442695, %v1227_v27  ;;  %v1580_v31 = vsub.f32 %v3891_v50, %v1563_v26 }
 0x207   : > { %v2124_v19 = vpop.eup %2123  ;;  %2135 = vpow2.f32 %v1242_v54  ;;  %v1594_v8 = vmul.f32 1.442695, %v1580_v31  ;;  %v3914_v31 = vsub.f32 %v3896_v12, %v2706_v2  ;;  %v3942_v12 = vld [vmem:[#allocation49_spill] sm:$0xff] }
 0x208   : > { %v2126_v11 = vpop.eup %2125  ;;  %v1565_v56 = vpop.permute.xlu1 %1564 }
 0x209   : > { %877 = vrot.lane.b32.xlu1 %v2124_v19, %s2294_s23  ;;  %1260 = vrot.lane.b32.xlu0 %v2126_v11, %s2294_s23  ;;  %v2128_v62 = vpop.eup %2127  ;;  %2137 = vpow2.f32 %v1594_v8  ;;  %v1581_v59 = vsub.f32 %v3898_v55, %v1565_v56  ;;  %v3912_v11 = vld [vmem:[#allocation27_spill] sm:$0xff]  ;;  %v921_v8 = vmul.f32 1.442695, %v3914_v31 }
 0x20a   : > { %v3913_v26 = vsub.f32 %v2393_v18, %v3912_v11 }
 0x20b   : > { %v2130_v38 = vpop.eup %2129  ;;  %v1596_v17 = vmul.f32 1.442695, %v1581_v59 }
 0x20c   : > { %v907_v54 = vmul.f32 1.442695, %v3913_v26  ;;  %v3920_v26 = vld [vmem:[#allocation13_spill] sm:$0xff] }
 0x20d   : > { %1616 = vrot.lane.b32.xlu0 %v2128_v62, %s2294_s23  ;;  %1614 = vrot.lane.b32.xlu1 %v2130_v38, %s2294_s23  ;;  %v2132_v0 = vpop.eup %2131  ;;  %2139 = vpow2.f32 %v1596_v17  ;;  %v3915_v62 = vsub.f32 %v3883_v33, %v2725_v15  ;;  %v3916_v38 = vsub.f32 %v2405_v23, %v2781_v24  ;;  %v3917_v17 = vsub.f32 %v2427_v29, %v2784_v7 }
 0x20e   : > { %2141 = vpow2.f32 %v907_v54  ;;  %v3921_v31 = vsub.f32 %v3920_v26, %v2875_v14  ;;  %v3922_v54 = vld [vmem:[#allocation10_spill] sm:$0xff] }
 0x20f   : > { %v2134_v13 = vpop.eup %2133  ;;  %v919_v56 = vmul.f32 1.442695, %v3915_v62  ;;  %v909_v59 = vmul.f32 1.442695, %v3916_v38  ;;  %2143 = vpow2.f32 %v921_v8  ;;  %v3923_v38 = vsub.f32 %v3922_v54, %v2888_v43  ;;  %v3924_v8 = vld [vmem:[#allocation38_spill] sm:$0xff]  ;;  %v3931_v54 = vld [vmem:[#allocation12_spill] sm:$0xff] }
 0x210   : > { %v1648_v62 = vmul.f32 1.442695, %v3921_v31 }
 0x211   : > { %1264 = vrot.lane.b32.xlu0 %v2132_v0, %s2294_s23  ;;  %1262 = vrot.lane.b32.xlu1 %v2134_v13, %s2294_s23  ;;  %v2136_v58 = vpop.eup %2135  ;;  %v911_v0 = vmul.f32 1.442695, %v3917_v17  ;;  %v3918_v13 = vsub.f32 %v2437_v34, %v2812_v20  ;;  %2145 = vpow2.f32 %v919_v56  ;;  %v1646_v17 = vmul.f32 1.442695, %v3923_v38  ;;  %v3932_v38 = vld [vmem:[#allocation45_spill] sm:$0xff] }
 0x212   : > { %2147 = vpow2.f32 %v909_v59  ;;  %v3925_v34 = vsub.f32 %v2455_v39, %v3924_v8  ;;  %v3927_v59 = vsub.f32 %v2493_v52, %v2950_v25  ;;  %v3934_v52 = vld [vmem:[#allocation46_spill] sm:$0xff] }
 0x213   : > { %v2138_v19 = vpop.eup %2137  ;;  %2149 = vpow2.f32 %v911_v0  ;;  %v3928_v0 = vsub.f32 %v2465_v42, %v2975_v6 }
 0x215   : > { %1266 = vrot.lane.b32.xlu0 %v2136_v58, %s2294_s23  ;;  %1618 = vrot.lane.b32.xlu1 %v2138_v19, %s2294_s23  ;;  %v1294_v58 = vmul.f32 1.442695, %v3918_v13  ;;  %v3919_v19 = vsub.f32 %v2421_v28, %v2838_v4  ;;  %v1296_v13 = vmul.f32 1.442695, %v3925_v34  ;;  %v3926_v28 = vsub.f32 %v2439_v35, %v2946_v53 }
 0x216   : > { %v915_v26 = vmul.f32 1.442695, %v3928_v0 }
 0x217   : > { %v2140_v27 = vpop.eup %2139  ;;  %2151 = vpow2.f32 %v1294_v58  ;;  %v913_v56 = vmul.f32 1.442695, %v3926_v28  ;;  %v3929_v58 = vld [vmem:[#allocation42_spill] sm:$0xff] }
 0x218   : > { %v3930_v39 = vsub.f32 %v2469_v44, %v3929_v58  ;;  %v3936_v44 = vld [vmem:[#allocation47_spill] sm:$0xff] }
 0x219   : > { %1620 = vrot.lane.b32.xlu1 %v2140_v27, %s2294_s23  ;;  %v1292_v27 = vmul.f32 1.442695, %v3919_v19  ;;  %v1650_v19 = vmul.f32 1.442695, %v3927_v59 }
 0x21a   : > { %v1298_v31 = vmul.f32 1.442695, %v3930_v39 }
 0x21b   : > { %2153 = vpow2.f32 %v1292_v27  ;;  %v3327_v27 = vpop.eup %2141 }
 0x21c   : > { %2155 = vpow2.f32 %v1648_v62  ;;  %v3933_v62 = vsub.f32 %v3931_v54, %v3932_v38  ;;  %v3332_v28 = vpop.eup %2143 }
 0x21d   : > { %2157 = vpow2.f32 %v1646_v17  ;;  %v3935_v17 = vsub.f32 %v2491_v51, %v3934_v52  ;;  %v3337_v0 = vpop.eup %2145  ;;  %v3940_v51 = vsub.f32 %v3909_v45, %v3912_v11  ;;  %v3945_v45 = vsub.f32 %v3884_v37, %v3157_v5 }
 0x21e   : > { %2159 = vpow2.f32 %v1296_v13  ;;  %v1652_v34 = vmul.f32 1.442695, %v3933_v62  ;;  %v3937_v13 = vsub.f32 %v2477_v48, %v3936_v44  ;;  %v3342_v55 = vpop.eup %2147  ;;  %v3950_v37 = vsub.f32 %v3903_v61, %v3199_v9 }
 0x21f   : > { %2161 = vpow2.f32 %v913_v56  ;;  %v1300_v59 = vmul.f32 1.442695, %v3935_v17  ;;  %v3938_v56 = vld [vmem:[#allocation17_spill] sm:$0xff]  ;;  %v3347_v50 = vpop.eup %2149 }
 0x220   : > { %2163 = vpow2.f32 %v1650_v19  ;;  %v917_v39 = vmul.f32 1.442695, %v3937_v13  ;;  %v3939_v54 = vsub.f32 %v3938_v56, %v3106_v63  ;;  %v787_v19 = vmul.f32 1.442695, %v3940_v51 }
 0x221   : > { %2165 = vpow2.f32 %v915_v26  ;;  %v3352_v17 = vpop.eup %2151  ;;  %v3941_v26 = vld [vmem:[#allocation21_spill] sm:$0xff] }
 0x222   : > { %2167 = vpow2.f32 %v1298_v31  ;;  %v1654_v62 = vmul.f32 1.442695, %v3939_v54  ;;  %v3943_v13 = vsub.f32 %v3941_v26, %v3942_v12  ;;  %v3944_v31 = vsub.f32 %v3886_v3, %v3132_v16 }
 0x223   : > { %2169 = vpow2.f32 %v1652_v34  ;;  %v1302_v34 = vmul.f32 1.442695, %v3945_v45  ;;  %v3949_v3 = vsub.f32 %v3894_v22, %v3183_v57 }
 0x224   : > { %2171 = vpow2.f32 %v1300_v59  ;;  %v1656_v48 = vmul.f32 1.442695, %v3943_v13  ;;  %v1304_v56 = vmul.f32 1.442695, %v3944_v31  ;;  %v3947_v59 = vsub.f32 %v3910_v49, %v2725_v15  ;;  %v3953_v49 = vld [vmem:[#allocation51_spill] sm:$0xff] }
 0x225   : > { %v3357_v33 = vpop.eup %2153  ;;  %2173 = vpow2.f32 %v917_v39  ;;  %v1306_v39 = vmul.f32 1.442695, %v3949_v3 }
 0x226   : > { %v3362_v54 = vpop.eup %2155  ;;  %2175 = vpow2.f32 %v1654_v62  ;;  %v799_v26 = vmul.f32 1.442695, %v3947_v59  ;;  %v1658_v62 = vmul.f32 1.442695, %v3950_v37 }
 0x227   : > { %v3367_v51 = vpop.eup %2157  ;;  %2177 = vpow2.f32 %v787_v19  ;;  %v3952_v19 = vld [vmem:[#allocation19_spill] sm:$0xff] }
 0x228   : > { %3946 = vst [vmem:[#allocation2_spill] sm:$0xff] %v3367_v51  ;;  %v3372_v13 = vpop.eup %2159  ;;  %2179 = vpow2.f32 %v1656_v48  ;;  %v3954_v59 = vsub.f32 %v3952_v19, %v3953_v49  ;;  %v3955_v48 = vsub.f32 %v2399_v21, %v2781_v24  ;;  %v3959_v21 = vsub.f32 %v2405_v23, %v2812_v20 }
 0x229   : > { %3948 = vst [vmem:[#allocation3_spill] sm:$0xff] %v3372_v13  ;;  %v3377_v31 = vpop.eup %2161  ;;  %2181 = vpow2.f32 %v1304_v56  ;;  %v3956_v56 = vld [vmem:[#allocation7_spill] sm:$0xff]  ;;  %v3964_v23 = vsub.f32 %v2429_v30, %v2888_v43  ;;  %v3966_v30 = vsub.f32 %v2433_v32, %v2946_v53 }
 0x22a   : > { %v3382_v45 = vpop.eup %2163  ;;  %2183 = vpow2.f32 %v1302_v34  ;;  %v1660_v51 = vmul.f32 1.442695, %v3954_v59  ;;  %v789_v22 = vmul.f32 1.442695, %v3955_v48  ;;  %v3957_v61 = vsub.f32 %v3956_v56, %v2784_v7 }
 0x22b   : > { %3951 = vst [vmem:[#allocation5_spill] sm:$0xff] %v3382_v45  ;;  %v3387_v13 = vpop.eup %2165  ;;  %2185 = vpow2.f32 %v799_v26  ;;  %v3958_v34 = vsub.f32 %v3911_v10, %v2706_v2  ;;  %v1174_v26 = vmul.f32 1.442695, %v3959_v21  ;;  %v3963_v10 = vsub.f32 %v2441_v36, %v2875_v14 }
 0x22c   : > { %v3392_v3 = vpop.eup %2167  ;;  %2187 = vpow2.f32 %v1306_v39  ;;  %v791_v37 = vmul.f32 1.442695, %v3957_v61  ;;  %v3961_v39 = vsub.f32 %v2393_v18, %v2838_v4  ;;  %v1526_v21 = vmul.f32 1.442695, %v3964_v23 }
 0x22d   : > { %v3397_v45 = vpop.eup %2169  ;;  %2189 = vpow2.f32 %v1658_v62  ;;  %v801_v19 = vmul.f32 1.442695, %v3958_v34  ;;  %v1528_v62 = vmul.f32 1.442695, %v3963_v10 }
 0x22e   : > { %v3402_v59 = vpop.eup %2171  ;;  %2191 = vpow2.f32 %v1660_v51  ;;  %v1172_v56 = vmul.f32 1.442695, %v3961_v39 }
 0x22f   : > { %v3407_v48 = vpop.eup %2173  ;;  %2193 = vpow2.f32 %v789_v22 }
 0x230   : > { %3960 = vst [vmem:[#allocation27_spill] sm:$0xff] %v3407_v48  ;;  %v3412_v61 = vpop.eup %2175  ;;  %2195 = vpow2.f32 %v791_v37  ;;  %v3965_v37 = vsub.f32 %v2427_v29, %v3924_v8 }
 0x231   : > { %3962 = vst [vmem:[#allocation13_spill] sm:$0xff] %v3412_v61  ;;  %v2178_v34 = vpop.eup %2177  ;;  %2197 = vpow2.f32 %v801_v19  ;;  %v793_v19 = vmul.f32 1.442695, %v3966_v30 }
 0x232   : > { %v3420_v48 = vpop.eup %2179  ;;  %2199 = vpow2.f32 %v1174_v26  ;;  %v1176_v39 = vmul.f32 1.442695, %v3965_v37  ;;  %v3967_v26 = vsub.f32 %v2457_v40, %v2975_v6  ;;  %v3969_v40 = vsub.f32 %v2475_v47, %v3932_v38 }
 0x233   : > { %v3422_v18 = vpop.eup %2181  ;;  %2201 = vpow2.f32 %v1172_v56 }
 0x234   : > { %v3427_v36 = vpop.eup %2183  ;;  %2203 = vpow2.f32 %v1528_v62  ;;  %v795_v56 = vmul.f32 1.442695, %v3967_v26 }
 0x235   : > { %v2186_v23 = vpop.eup %2185  ;;  %2205 = vpow2.f32 %v1526_v21  ;;  %v1532_v21 = vmul.f32 1.442695, %v3969_v40 }
 0x256   : > { %v868_v51 = vpop.permute.xlu0 %867 }
 0x257   : > { %v891_v22 = vadd.f32 %v2178_v34, %v868_v51  ;;  %v3436_v34 = vpop.eup %2187 }
 0x258   : > { %v3438_v51 = vpop.eup %2189 }
 0x259   : > { %v923_v10 = vadd.f32 %v3327_v27, %v891_v22  ;;  %v3968_v27 = vsub.f32 %v2463_v41, %v2950_v25  ;;  %v3443_v32 = vpop.eup %2191  ;;  %v3971_v41 = vsub.f32 %v2465_v42, %v3934_v52 }
 0x25a   : > { %v880_v61 = vpop.permute.xlu0 %879  ;;  %v2194_v37 = vpop.eup %2193 }
 0x25b   : > { %2207 = vlog2.f32 %v923_v10  ;;  %v897_v29 = vadd.f32 %v2186_v23, %v880_v61  ;;  %v1530_v62 = vmul.f32 1.442695, %v3968_v27  ;;  %v3970_v61 = vsub.f32 %v2439_v35, %v3929_v58 }
 0x25c   : > { %2209 = vpow2.f32 %v1176_v39  ;;  %v2196_v39 = vpop.eup %2195  ;;  %v1180_v23 = vmul.f32 1.442695, %v3971_v41  ;;  %v3972_v35 = vsub.f32 %v2473_v46, %v3936_v44 }
 0x25d   : > { %v929_v22 = vadd.f32 %v3337_v0, %v897_v29  ;;  %2211 = vpow2.f32 %v793_v19  ;;  %v1178_v10 = vmul.f32 1.442695, %v3970_v61  ;;  %v2198_v26 = vpop.eup %2197 }
 0x25e   : > { %2213 = vpow2.f32 %v795_v56  ;;  %v872_v30 = vpop.permute.xlu0 %871  ;;  %v2200_v29 = vpop.eup %2199 }
 0x25f   : > { %2215 = vlog2.f32 %v929_v22  ;;  %v870_v0 = vpop.permute.xlu1 %869  ;;  %v893_v19 = vadd.f32 %v2196_v39, %v872_v30  ;;  %v2202_v27 = vpop.eup %2201  ;;  %v797_v22 = vmul.f32 1.442695, %v3972_v35  ;;  %v3973_v39 = vsub.f32 %v2513_v60, %v3942_v12 }
 0x260   : > { %2217 = vpow2.f32 %v1530_v62  ;;  %v892_v47 = vadd.f32 %v2194_v37, %v870_v0  ;;  %v2204_v40 = vpop.eup %2203 }
 0x261   : > { %2219 = vpow2.f32 %v1532_v21  ;;  %v925_v56 = vadd.f32 %v3347_v50, %v893_v19  ;;  %v1536_v62 = vmul.f32 1.442695, %v3973_v39  ;;  %v2206_v30 = vpop.eup %2205 }
 0x262   : > { %2221 = vpow2.f32 %v1178_v10  ;;  %v924_v61 = vadd.f32 %v3342_v55, %v892_v47  ;;  %v1255_v42 = vpop.permute.xlu0 %1254  ;;  %v3974_v55 = vsub.f32 %v3876_v1, %v3106_v63  ;;  %v3975_v47 = vld [vmem:[#allocation4_spill] sm:$0xff] }
 0x263   : > { %2223 = vpow2.f32 %v1180_v23  ;;  %v882_v21 = vpop.permute.xlu1 %881  ;;  %v1277_v37 = vadd.f32 %v2200_v29, %v1255_v42  ;;  %v3976_v29 = vsub.f32 %v3975_v47, %v3132_v16  ;;  %v3979_v42 = vld [vmem:[#allocation8_spill] sm:$0xff] }
 0x264   : > { %2225 = vlog2.f32 %v925_v56  ;;  %v898_v50 = vadd.f32 %v2198_v26, %v882_v21  ;;  %v1534_v23 = vmul.f32 1.442695, %v3974_v55  ;;  %v3977_v26 = vld [vmem:[#allocation28_spill] sm:$0xff]  ;;  %v3980_v1 = vsub.f32 %v3979_v42, %v3157_v5 }
 0x265   : > { %v2208_v41 = vpop.eup %2207  ;;  %2227 = vlog2.f32 %v924_v61  ;;  %v1309_v46 = vadd.f32 %v3352_v17, %v1277_v37  ;;  %v1184_v56 = vmul.f32 1.442695, %v3976_v29  ;;  %v3978_v61 = vsub.f32 %v3977_v26, %v3912_v11  ;;  %v3981_v29 = vld [vmem:[#allocation31_spill] sm:$0xff] }
 0x266   : > { %v2210_v10 = vpop.eup %2209  ;;  %v932_v0 = vmul.f32 0.6931472, %v2208_v41  ;;  %2229 = vpow2.f32 %v797_v22  ;;  %v930_v60 = vadd.f32 %v3332_v28, %v898_v50  ;;  %v1182_v39 = vmul.f32 1.442695, %v3980_v1 }
 0x267   : > { %v2212_v19 = vpop.eup %2211  ;;  %2231 = vpow2.f32 %v1536_v62  ;;  %v1253_v22 = vpop.permute.xlu1 %1252 }
 0x268   : > { %v3471_v35 = vpop.eup %2213  ;;  %v1019_v17 = vsub.f32 %v3978_v61, %v932_v0  ;;  %2233 = vlog2.f32 %v1309_v46  ;;  %v1276_v28 = vadd.f32 %v2202_v27, %v1253_v22  ;;  %v1609_v62 = vpop.permute.xlu0 %1608 }
 0x269   : > { %v2216_v21 = vpop.eup %2215  ;;  %2235 = vlog2.f32 %v930_v60  ;;  %v1631_v55 = vadd.f32 %v2204_v40, %v1609_v62  ;;  %v3982_v60 = vsub.f32 %v3981_v29, %v2725_v15 }
 0x26a   : > { %v3479_v37 = vpop.eup %2217  ;;  %v1028_v41 = vsel %vm1027_vm1, %v1019_v17, 0.0  ;;  %v944_v50 = vmul.f32 0.6931472, %v2216_v21  ;;  %2237 = vpow2.f32 %v1534_v23  ;;  %v1308_v0 = vadd.f32 %v3357_v33, %v1276_v28  ;;  %v3983_v17 = vld [vmem:[#allocation6_spill] sm:$0xff] }
 0x26b   : > { %v3482_v47 = vpop.eup %2219  ;;  %v1029_v11 = vrot.slane %v1028_v41, 4  ;;  %2239 = vpow2.f32 %v1184_v56  ;;  %v1663_v26 = vadd.f32 %v3362_v54, %v1631_v55  ;;  %v1607_v61 = vpop.permute.xlu1 %1606  ;;  %v3984_v40 = vsub.f32 %v3983_v17, %v3183_v57  ;;  %v3986_v17 = vld [vmem:[#allocation3_spill] sm:$0xff] }
 0x26c   : > { %v3485_v46 = vpop.eup %2221  ;;  %v1025_v27 = vsub.f32 %v3982_v60, %v944_v50  ;;  %2241 = vpow2.f32 %v1182_v39  ;;  %v1630_v33 = vadd.f32 %v2206_v30, %v1607_v61  ;;  %v1257_v56 = vpop.permute.xlu0 %1256  ;;  %v3985_v39 = vld [vmem:[#allocation2_spill] sm:$0xff] }
 0x26d   : > { %v1186_v23 = vmul.f32 1.442695, %v3984_v40  ;;  %v3494_v22 = vpop.eup %2223  ;;  %v1030_v42 = vadd.f32 %v1029_v11, %v1028_v41  ;;  %2243 = vlog2.f32 %v1308_v0  ;;  %v1278_v15 = vadd.f32 %v2210_v10, %v1257_v56  ;;  %v3987_v0 = vld [vmem:[#allocation33_spill] sm:$0xff] }
 0x26e   : > { %v2226_v1 = vpop.eup %2225  ;;  %v1070_v21 = vsel %vm1027_vm1, %v1025_v27, 0.0  ;;  %2245 = vlog2.f32 %v1663_v26  ;;  %v1662_v55 = vadd.f32 %v3985_v39, %v1630_v33  ;;  %v3988_v27 = vsub.f32 %v3987_v0, %v2784_v7  ;;  %v3989_v26 = vld [vmem:[#allocation16_spill] sm:$0xff] }
 0x26f   : > { %v2228_v28 = vpop.eup %2227  ;;  %v1031_v62 = vrot.slane %v1030_v42, 2  ;;  %v1071_v54 = vrot.slane %v1070_v21, 4  ;;  %v936_v50 = vmul.f32 0.6931472, %v2226_v1  ;;  %v1310_v40 = vadd.f32 %v3986_v17, %v1278_v15  ;;  %v874_v41 = vpop.permute.xlu1 %873  ;;  %v3991_v1 = vld [vmem:[#allocation32_spill] sm:$0xff] }
 0x270   : > { %v3498_v29 = vpop.eup %2229  ;;  %v934_v60 = vmul.f32 0.6931472, %v2228_v28  ;;  %2247 = vpow2.f32 %v1186_v23  ;;  %v3990_v61 = vsub.f32 %v3989_v26, %v3199_v9  ;;  %v3992_v28 = vsub.f32 %v3991_v1, %v2781_v24  ;;  %v3993_v23 = vld [vmem:[#allocation20_spill] sm:$0xff] }
 0x271   : > { %v3501_v30 = vpop.eup %2231  ;;  %v1032_v11 = vadd.f32 %v1031_v62, %v1030_v42  ;;  %v1021_v10 = vsub.f32 %v3988_v27, %v936_v50  ;;  %2249 = vlog2.f32 %v1662_v55  ;;  %v894_v15 = vadd.f32 %v2212_v19, %v874_v41  ;;  %v876_v55 = vpop.permute.xlu0 %875 }
 0x272   : > { %v1538_v56 = vmul.f32 1.442695, %v3990_v61  ;;  %v2234_v33 = vpop.eup %2233  ;;  %v1020_v39 = vsub.f32 %v3992_v28, %v934_v60  ;;  %2251 = vlog2.f32 %v1310_v40  ;;  %v3994_v17 = vsub.f32 %v3993_v23, %v3953_v49  ;;  %v3997_v28 = vld [vmem:[#allocation30_spill] sm:$0xff] }
 0x273   : > { %v2236_v62 = vpop.eup %2235  ;;  %v1072_v57 = vadd.f32 %v1071_v54, %v1070_v21  ;;  %v1042_v7 = vsel %vm1027_vm1, %v1021_v10, 0.0  ;;  %v1319_v50 = vmul.f32 0.6931472, %v2234_v33  ;;  %v926_v60 = vadd.f32 %v3377_v31, %v894_v15  ;;  %v3520_v19 = vpop.permute.xlu1 %1610  ;;  %v3995_v21 = vld [vmem:[#allocation34_spill] sm:$0xff] }
 0x274   : > { %v1540_v42 = vmul.f32 1.442695, %v3994_v17  ;;  %v3516_v0 = vpop.eup %2237  ;;  %v1035_v27 = vsel %vm1027_vm1, %v1020_v39, 0.0  ;;  %v1043_v26 = vrot.slane %v1042_v7, 4  ;;  %v946_v24 = vmul.f32 0.6931472, %v2236_v62 }
 0x275   : > { %v3522_v40 = vpop.eup %2239  ;;  %v1033_v41 = vrot.slane %v1032_v11, 1  ;;  %v1036_v61 = vrot.slane %v1035_v27, 4  ;;  %v3996_v54 = vsub.f32 %v3995_v21, %v2812_v20  ;;  %2253 = vpow2.f32 %v1538_v56  ;;  %v3999_v21 = vld [vmem:[#allocation35_spill] sm:$0xff] }
 0x276   : > { %v3527_v33 = vpop.eup %2241  ;;  %v1044_v1 = vadd.f32 %v1043_v26, %v1042_v7  ;;  %v3998_v39 = vsub.f32 %v3997_v28, %v2706_v2  ;;  %2255 = vlog2.f32 %v926_v60  ;;  %v895_v31 = vadd.f32 %v3471_v35, %v876_v55 }
 0x277   : > { %v1381_v10 = vsub.f32 %v3996_v54, %v1319_v50  ;;  %v2244_v15 = vpop.eup %2243  ;;  %v1073_v17 = vrot.slane %v1072_v57, 2  ;;  %v1037_v62 = vadd.f32 %v1036_v61, %v1035_v27  ;;  %2257 = vpow2.f32 %v1540_v42  ;;  %v3535_v26 = vpop.permute.xlu1 %1258 }
 0x278   : > { %v1026_v23 = vsub.f32 %v3998_v39, %v946_v24  ;;  %v2246_v9 = vpop.eup %2245  ;;  %v1045_v20 = vrot.slane %v1044_v1, 2  ;;  %v1317_v7 = vmul.f32 0.6931472, %v2244_v15  ;;  %v1034_v2 = vadd.f32 %v1033_v41, %v1032_v11  ;;  %v3537_v55 = vpop.permute.xlu0 %1612  ;;  %v4001_v15 = vld [vmem:[#allocation36_spill] sm:$0xff] }
 0x279   : > { %v1396_v49 = vsel %vm1388_vm7, %v1381_v10, 0.0  ;;  %v1038_v24 = vrot.slane %v1037_v62, 2  ;;  %v1673_v35 = vmul.f32 0.6931472, %v2246_v9  ;;  %v4000_v54 = vsub.f32 %v3999_v21, %v2838_v4 }
 0x27a   : > { %v1077_v56 = vsel %vm1027_vm1, %v1026_v23, 0.0  ;;  %v1397_v50 = vrot.slane %v1396_v49, 4  ;;  %v3539_v27 = vpop.eup %2247  ;;  %v1046_v61 = vadd.f32 %v1045_v20, %v1044_v1  ;;  %v927_v28 = vadd.f32 %v3387_v13, %v895_v31 }
 0x27b   : > { %v1078_v60 = vrot.slane %v1077_v56, 4  ;;  %v1380_v10 = vsub.f32 %v4000_v54, %v1317_v7  ;;  %v2250_v39 = vpop.eup %2249  ;;  %v3545_v23 = vadd.f32 %v1073_v17, %v1072_v57  ;;  %v1039_v11 = vadd.f32 %v1038_v24, %v1037_v62  ;;  %v3551_v20 = vpop.permute.xlu1 %877 }
 0x27c   : > { %v1398_v42 = vadd.f32 %v1397_v50, %v1396_v49  ;;  %v4002_v9 = vsub.f32 %v4001_v15, %v2875_v14  ;;  %v2252_v16 = vpop.eup %2251  ;;  %v1047_v63 = vrot.slane %v1046_v61, 1  ;;  %v1671_v1 = vmul.f32 0.6931472, %v2250_v39  ;;  %v3554_v31 = vpop.permute.xlu0 %1260  ;;  %v4003_v14 = vld [vmem:[#allocation37_spill] sm:$0xff] }
 0x27d   : > { %v1079_v41 = vadd.f32 %v1078_v60, %v1077_v56  ;;  %v1389_v49 = vsel %vm1388_vm7, %v1380_v10, 0.0  ;;  %v1040_v4 = vrot.slane %v1039_v11, 1  ;;  %v4004_v7 = vsub.f32 %v4003_v14, %v2888_v43 }
 0x27e   : > { %v1759_v5 = vsub.f32 %v4002_v9, %v1673_v35  ;;  %v1399_v12 = vrot.slane %v1398_v42, 2  ;;  %v1390_v13 = vrot.slane %v1389_v49, 4  ;;  %v1048_v17 = vadd.f32 %v1047_v63, %v1046_v61 }
 0x27f   : > { %v1080_v50 = vrot.slane %v1079_v41, 2  ;;  %v1758_v24 = vsub.f32 %v4004_v7, %v1671_v1  ;;  %v3559_v60 = vpop.eup %2253  ;;  %v1041_v35 = vadd.f32 %v1040_v4, %v1039_v11  ;;  %v1321_v10 = vmul.f32 0.6931472, %v2252_v16  ;;  %v4005_v11 = vld [vmem:[#allocation39_spill] sm:$0xff]  ;;  %v1615_v4 = vpop.permute.xlu1 %1614 }
 0x280   : > { %v1773_v57 = vsel %vm1027_vm1, %v1759_v5, 0.0  ;;  %v1400_v62 = vadd.f32 %v1399_v12, %v1398_v42  ;;  %v1391_v54 = vadd.f32 %v1390_v13, %v1389_v49  ;;  %v2256_v39 = vpop.eup %2255  ;;  %v1086_v15 = vmul.f32 0.125, %v1048_v17  ;;  %v1617_v1 = vpop.permute.xlu0 %1616 }
 0x281   : > { %v1774_v56 = vrot.slane %v1773_v57, 4  ;;  %v3561_v21 = vadd.f32 %v1080_v50, %v1079_v41  ;;  %v1766_v44 = vsel %vm1027_vm1, %v1758_v24, 0.0  ;;  %v3564_v63 = vpop.eup %2257  ;;  %v1084_v12 = vmul.f32 0.125, %v1034_v2 }
 0x282   : > { %v1401_v9 = vrot.slane %v1400_v62, 1  ;;  %v1085_v61 = vmul.f32 0.125, %v1041_v35  ;;  %v1392_v42 = vrot.slane %v1391_v54, 2  ;;  %v1767_v43 = vrot.slane %v1766_v44, 4 }
 0x283   : > { %v1775_v5 = vadd.f32 %v1774_v56, %v1773_v57  ;;  %v4006_v41 = vsub.f32 %v4005_v11, %v3924_v8  ;;  %v938_v16 = vmul.f32 0.6931472, %v2256_v39  ;;  %v1082_v56 = vrot.slane %v3561_v21, 1  ;;  %v4007_v11 = vld [vmem:[#allocation40_spill] sm:$0xff] }
 0x284   : > { %v1402_v14 = vadd.f32 %v1401_v9, %v1400_v62  ;;  %v1101_v13 = vsel %vm1100_vm6, %v1085_v61, %v1084_v12  ;;  %v1393_v57 = vadd.f32 %v1392_v42, %v1391_v54  ;;  %v1768_v17 = vadd.f32 %v1767_v43, %v1766_v44  ;;  %v1265_v61 = vpop.permute.xlu0 %1264  ;;  %v1263_v42 = vpop.permute.xlu1 %1262 }
 0x285   : > { %v1776_v7 = vrot.slane %v1775_v5, 2  ;;  %v1382_v49 = vsub.f32 %v4006_v41, %v1321_v10  ;;  %v3572_v2 = vsel %vm1102_vm4, %v1086_v15, %v1101_v13  ;;  %v4008_v41 = vsub.f32 %v4007_v11, %v2946_v53 }
 0x286   : > { %v1446_v35 = vmul.f32 0.125, %v1402_v14  ;;  %v1394_v9 = vrot.slane %v1393_v57, 1  ;;  %v1769_v8 = vrot.slane %v1768_v17, 2  ;;  %2259 = vlog2.f32 %v927_v28 }
 0x287   : > { %v1777_v24 = vadd.f32 %v1776_v7, %v1775_v5  ;;  %v1403_v62 = vsel %vm1388_vm7, %v1382_v49, 0.0  ;;  %v1022_v50 = vsub.f32 %v4008_v41, %v938_v16  ;;  %v1632_v44 = vadd.f32 %v3479_v37, %v3520_v19  ;;  %v4009_v7 = vld [vmem:[#allocation5_spill] sm:$0xff] }
 0x288   : > { %v1404_v10 = vrot.slane %v1403_v62, 4  ;;  %v1395_v54 = vadd.f32 %v1394_v9, %v1393_v57  ;;  %v1770_v15 = vadd.f32 %v1769_v8, %v1768_v17  ;;  %v1633_v5 = vadd.f32 %v3482_v47, %v3537_v55  ;;  %v1619_v9 = vpop.permute.xlu1 %1618 }
 0x289   : > { %v1778_v39 = vrot.slane %v1777_v24, 1  ;;  %v1049_v14 = vsel %vm1027_vm1, %v1022_v50, 0.0  ;;  %v1664_v49 = vadd.f32 %v4009_v7, %v1632_v44  ;;  %v1279_v53 = vadd.f32 %v3485_v46, %v3535_v26  ;;  %v4012_v7 = vld [vmem:[#allocation43_spill] sm:$0xff] }
 0x28a   : > { %v1405_v12 = vadd.f32 %v1404_v10, %v1403_v62  ;;  %v1445_v28 = vmul.f32 0.125, %v1395_v54  ;;  %v1771_v16 = vrot.slane %v1770_v15, 1  ;;  %v1050_v37 = vrot.slane %v1049_v14, 4 }
 0x28b   : > { %v1779_v43 = vadd.f32 %v1778_v39, %v1777_v24  ;;  %2261 = vlog2.f32 %v1664_v49  ;;  %v1665_v57 = vadd.f32 %v3397_v45, %v1633_v5  ;;  %v1311_v47 = vadd.f32 %v3392_v3, %v1279_v53  ;;  %v1267_v3 = vpop.permute.xlu0 %1266  ;;  %v4010_v39 = vld [vmem:[#allocation27_spill] sm:$0xff] }
 0x28c   : > { %v1406_v13 = vrot.slane %v1405_v12, 2  ;;  %v1461_v55 = vsel %vm1100_vm6, %v1446_v35, %v1445_v28  ;;  %v1772_v17 = vadd.f32 %v1771_v16, %v1770_v15  ;;  %v1051_v50 = vadd.f32 %v1050_v37, %v1049_v14 }
 0x28d   : > { %v1823_v19 = vmul.f32 0.125, %v1779_v43  ;;  %2263 = vlog2.f32 %v1665_v57  ;;  %v1280_v62 = vadd.f32 %v3494_v22, %v3554_v31  ;;  %v896_v46 = vadd.f32 %v3498_v29, %v3551_v20 }
 0x28e   : > { %v1407_v24 = vadd.f32 %v1406_v13, %v1405_v12  ;;  %v1635_v26 = vadd.f32 %v3501_v30, %v1617_v1  ;;  %v1822_v8 = vmul.f32 0.125, %v1772_v17  ;;  %v1052_v45 = vrot.slane %v1051_v50, 2  ;;  %v4011_v1 = vld [vmem:[#allocation13_spill] sm:$0xff] }
 0x28f   : > { %2265 = vlog2.f32 %v1311_v47  ;;  %v1312_v35 = vadd.f32 %v3402_v59, %v1280_v62  ;;  %v928_v11 = vadd.f32 %v4010_v39, %v896_v46  ;;  %v1634_v44 = vadd.f32 %v3516_v0, %v1615_v4  ;;  %v1621_v0 = vpop.permute.xlu1 %1620  ;;  %v4015_v47 = vld [vmem:[#allocation41_spill] sm:$0xff] }
 0x290   : > { %v1408_v10 = vrot.slane %v1407_v24, 1  ;;  %v1667_v41 = vadd.f32 %v3420_v48, %v1635_v26  ;;  %v3600_v22 = vsel %vm1100_vm6, %v1823_v19, %v1822_v8  ;;  %v1053_v20 = vadd.f32 %v1052_v45, %v1051_v50  ;;  %v2260_v31 = vpop.eup %2259 }
 0x291   : > { %v1282_v30 = vadd.f32 %v3522_v40, %v1265_v61  ;;  %2267 = vlog2.f32 %v1312_v35  ;;  %v1666_v54 = vadd.f32 %v4011_v1, %v1634_v44  ;;  %v1281_v15 = vadd.f32 %v3527_v33, %v1263_v42 }
 0x292   : > { %v1409_v29 = vadd.f32 %v1408_v10, %v1407_v24  ;;  %v1283_v59 = vadd.f32 %v3539_v27, %v1267_v3  ;;  %v1054_v5 = vrot.slane %v1053_v20, 1  ;;  %v940_v48 = vmul.f32 0.6931472, %v2260_v31 }
 0x293   : > { %2269 = vlog2.f32 %v928_v11  ;;  %v1314_v4 = vadd.f32 %v3422_v18, %v1282_v30  ;;  %v1313_v43 = vadd.f32 %v3427_v36, %v1281_v15  ;;  %v4013_v33 = vsub.f32 %v4012_v7, %v2975_v6  ;;  %v4021_v30 = vld [vmem:[#allocation25_spill] sm:$0xff]  ;;  %v4026_v7 = vld [vmem:[#allocation50_spill] sm:$0xff] }
 0x294   : > { %v1447_v12 = vmul.f32 0.125, %v1409_v29  ;;  %2271 = vlog2.f32 %v1667_v41  ;;  %v1315_v40 = vadd.f32 %v3436_v34, %v1283_v59  ;;  %v1055_v14 = vadd.f32 %v1054_v5, %v1053_v20 }
 0x295   : > { %v1023_v27 = vsub.f32 %v4013_v33, %v940_v48  ;;  %2273 = vlog2.f32 %v1666_v54  ;;  %v2262_v42 = vpop.eup %2261  ;;  %v1636_v49 = vadd.f32 %v3559_v60, %v1619_v9  ;;  %v1637_v53 = vadd.f32 %v3564_v63, %v1621_v0  ;;  %v4027_v33 = vld [vmem:[#allocation49_spill] sm:$0xff] }
 0x296   : > { %v3610_v61 = vsel %vm1102_vm4, %v1447_v12, %v1461_v55  ;;  %v4014_v18 = vrot.slane %v3545_v23, 1  ;;  %v1087_v34 = vmul.f32 0.125, %v1055_v14  ;;  %v1675_v16 = vmul.f32 0.6931472, %v2262_v42 }
 0x297   : > { %v1056_v28 = vsel %vm1027_vm1, %v1023_v27, 0.0  ;;  %v2264_v13 = vpop.eup %2263  ;;  %v1083_v6 = vadd.f32 %v1082_v56, %v3561_v21  ;;  %v1668_v19 = vadd.f32 %v3438_v51, %v1636_v49  ;;  %v1669_v60 = vadd.f32 %v3443_v32, %v1637_v53  ;;  %v4017_v21 = vld [vmem:[#allocation24_spill] sm:$0xff] }
 0x298   : > { %v1076_v36 = vadd.f32 %v4014_v18, %v3545_v23  ;;  %v1057_v37 = vrot.slane %v1056_v28, 4  ;;  %v1105_v63 = vsel %vm1104_vm9, %v1087_v34, %v3572_v2  ;;  %v4016_v23 = vsub.f32 %v4015_v47, %v2950_v25  ;;  %v4019_v25 = vld [vmem:[#allocation44_spill] sm:$0xff] }
 0x299   : > { %v2266_v57 = vpop.eup %2265  ;;  %v1677_v17 = vmul.f32 0.6931472, %v2264_v13  ;;  %2275 = vlog2.f32 %v1314_v4  ;;  %v4018_v32 = vsub.f32 %v4017_v21, %v3932_v38  ;;  %v4020_v9 = vsub.f32 %v4019_v25, %v3929_v58  ;;  %v4023_v4 = vld [vmem:[#allocation9_spill] sm:$0xff]  ;;  %v4029_v13 = vld [vmem:[#allocation11_spill] sm:$0xff] }
 0x29a   : > { %v1760_v55 = vsub.f32 %v4016_v23, %v1675_v16  ;;  %v1058_v24 = vadd.f32 %v1057_v37, %v1056_v28  ;;  %v1323_v50 = vmul.f32 0.6931472, %v2266_v57  ;;  %2277 = vlog2.f32 %v1313_v43  ;;  %v4024_v43 = vld [vmem:[#allocation47_spill] sm:$0xff] }
 0x29b   : > { %v3631_v62 = vmul.f32 0.125, %v1076_v36  ;;  %v1761_v56 = vsub.f32 %v4018_v32, %v1677_v17  ;;  %2279 = vlog2.f32 %v1315_v40  ;;  %v2268_v2 = vpop.eup %2267  ;;  %v3640_v45 = vmul.f32 0.125, %v1083_v6  ;;  %v4030_v6 = vld [vmem:[#allocation48_spill] sm:$0xff] }
 0x29c   : > { %v1780_v51 = vsel %vm1027_vm1, %v1760_v55, 0.0  ;;  %v1059_v46 = vrot.slane %v1058_v24, 2  ;;  %v1383_v8 = vsub.f32 %v4020_v9, %v1323_v50  ;;  %2281 = vlog2.f32 %v1668_v19 }
 0x29d   : > { %v1781_v26 = vrot.slane %v1780_v51, 4  ;;  %v2270_v10 = vpop.eup %2269  ;;  %v1787_v3 = vsel %vm1027_vm1, %v1761_v56, 0.0  ;;  %v1325_v35 = vmul.f32 0.6931472, %v2268_v2  ;;  %2283 = vlog2.f32 %v1669_v60 }
 0x29e   : > { %v2272_v39 = vpop.eup %2271  ;;  %v1060_v11 = vadd.f32 %v1059_v46, %v1058_v24  ;;  %v1788_v41 = vrot.slane %v1787_v3, 4  ;;  %v1410_v44 = vsel %vm1388_vm7, %v1383_v8, 0.0  ;;  %v4022_v58 = vsub.f32 %v4021_v30, %v3934_v52 }
 0x29f   : > { %v1782_v38 = vadd.f32 %v1781_v26, %v1780_v51  ;;  %v2274_v29 = vpop.eup %2273  ;;  %v1411_v20 = vrot.slane %v1410_v44, 4  ;;  %v942_v1 = vmul.f32 0.6931472, %v2270_v10  ;;  %v1681_v54 = vmul.f32 0.6931472, %v2272_v39 }
 0x2a0   : > { %v1384_v31 = vsub.f32 %v4022_v58, %v1325_v35  ;;  %v1061_v15 = vrot.slane %v1060_v11, 1  ;;  %v1789_v12 = vadd.f32 %v1788_v41, %v1787_v3  ;;  %v1679_v5 = vmul.f32 0.6931472, %v2274_v29 }
 0x2a1   : > { %v1783_v59 = vrot.slane %v1782_v38, 2  ;;  %v1412_v48 = vadd.f32 %v1411_v20, %v1410_v44  ;;  %v4025_v40 = vsub.f32 %v4023_v4, %v4024_v43  ;;  %v4028_v27 = vsub.f32 %v4026_v7, %v4027_v33 }
 0x2a2   : > { %v1417_v0 = vsel %vm1388_vm7, %v1384_v31, 0.0  ;;  %v1062_v49 = vadd.f32 %v1061_v15, %v1060_v11  ;;  %v1790_v53 = vrot.slane %v1789_v12, 2  ;;  %v4031_v37 = vsub.f32 %v4029_v13, %v4030_v6  ;;  %v4032_v31 = vld [vmem:[#allocation23_spill] sm:$0xff] }
 0x2a3   : > { %v1024_v14 = vsub.f32 %v4025_v40, %v942_v1  ;;  %v1763_v42 = vsub.f32 %v4028_v27, %v1681_v54  ;;  %v1784_v52 = vadd.f32 %v1783_v59, %v1782_v38  ;;  %v1418_v18 = vrot.slane %v1417_v0, 4  ;;  %v2276_v36 = vpop.eup %2275  ;;  %v4033_v1 = vld [vmem:[#allocation14_spill] sm:$0xff] }
 0x2a4   : > { %v1413_v34 = vrot.slane %v1412_v48, 2  ;;  %v1762_v19 = vsub.f32 %v4031_v37, %v1679_v5  ;;  %v2278_v60 = vpop.eup %2277  ;;  %v1088_v57 = vmul.f32 0.125, %v1062_v49  ;;  %v1791_v23 = vadd.f32 %v1790_v53, %v1789_v12  ;;  %v4035_v49 = vld [vmem:[#allocation18_spill] sm:$0xff] }
 0x2a5   : > { %v1063_v28 = vsel %vm1027_vm1, %v1024_v14, 0.0  ;;  %v1801_v16 = vsel %vm1027_vm1, %v1763_v42, 0.0  ;;  %v1785_v47 = vrot.slane %v1784_v52, 1  ;;  %v1419_v55 = vadd.f32 %v1418_v18, %v1417_v0  ;;  %v2280_v17 = vpop.eup %2279 }
 0x2a6   : > { %v1414_v24 = vadd.f32 %v1413_v34, %v1412_v48  ;;  %v1064_v50 = vrot.slane %v1063_v28, 4  ;;  %v1802_v51 = vrot.slane %v1801_v16, 4  ;;  %v1794_v21 = vsel %vm1027_vm1, %v1762_v19, 0.0  ;;  %v2282_v32 = vpop.eup %2281 }
 0x2a7   : > { %v1107_v56 = vsel %vm1106_vm0, %v1088_v57, %v1105_v63  ;;  %v1786_v2 = vadd.f32 %v1785_v47, %v1784_v52  ;;  %v1792_v46 = vrot.slane %v1791_v23, 1  ;;  %v1420_v26 = vrot.slane %v1419_v55, 2  ;;  %v2284_v25 = vpop.eup %2283  ;;  %v4036_v52 = vld [vmem:[#allocation26_spill] sm:$0xff] }
 0x2a8   : > { %v1415_v9 = vrot.slane %v1414_v24, 1  ;;  %v1065_v8 = vadd.f32 %v1064_v50, %v1063_v28  ;;  %v1803_v10 = vadd.f32 %v1802_v51, %v1801_v16  ;;  %v1795_v3 = vrot.slane %v1794_v21, 4 }
 0x2a9   : > { %v1824_v35 = vmul.f32 0.125, %v1786_v2  ;;  %v1793_v39 = vadd.f32 %v1792_v46, %v1791_v23  ;;  %v1421_v11 = vadd.f32 %v1420_v26, %v1419_v55  ;;  %v1329_v38 = vmul.f32 0.6931472, %v2276_v36  ;;  %v4042_v2 = vld [vmem:[#allocation15_spill] sm:$0xff] }
 0x2aa   : > { %v1416_v41 = vadd.f32 %v1415_v9, %v1414_v24  ;;  %v1066_v44 = vrot.slane %v1065_v8, 2  ;;  %v1804_v63 = vrot.slane %v1803_v10, 2  ;;  %v1796_v29 = vadd.f32 %v1795_v3, %v1794_v21  ;;  %v4041_v21 = vld [vmem:[#allocation52_spill] sm:$0xff] }
 0x2ab   : > { %v1839_v20 = vsel %vm1102_vm4, %v1824_v35, %v3600_v22  ;;  %v1825_v30 = vmul.f32 0.125, %v1793_v39  ;;  %v1422_v58 = vrot.slane %v1421_v11, 1  ;;  %v4034_v54 = vsub.f32 %v4032_v31, %v4033_v1 }
 0x2ac   : > { %v1448_v59 = vmul.f32 0.125, %v1416_v41  ;;  %v1067_v12 = vadd.f32 %v1066_v44, %v1065_v8  ;;  %v1805_v5 = vadd.f32 %v1804_v63, %v1803_v10  ;;  %v1797_v48 = vrot.slane %v1796_v29, 2  ;;  %v4045_v41 = vld [vmem:[#allocation51_spill] sm:$0xff] }
 0x2ad   : > { %v1386_v15 = vsub.f32 %v4034_v54, %v1329_v38  ;;  %v1840_v0 = vsel %vm1104_vm9, %v1825_v30, %v1839_v20  ;;  %v1423_v4 = vadd.f32 %v1422_v58, %v1421_v11  ;;  %v1327_v40 = vmul.f32 0.6931472, %v2278_v60  ;;  %v4039_v60 = vld [vmem:[#allocation22_spill] sm:$0xff]  ;;  %v4044_v38 = vld [vmem:[#allocation53_spill] sm:$0xff] }
 0x2ae   : > { %v1463_v22 = vsel %vm1104_vm9, %v1448_v59, %v3610_v61  ;;  %v1068_v14 = vrot.slane %v1067_v12, 1  ;;  %v1806_v7 = vrot.slane %v1805_v5, 1  ;;  %v1798_v33 = vadd.f32 %v1797_v48, %v1796_v29  ;;  %v4038_v61 = vld [vmem:[#allocation29_spill] sm:$0xff] }
 0x2af   : > { %v1431_v43 = vsel %vm1388_vm7, %v1386_v15, 0.0  ;;  %v1449_v27 = vmul.f32 0.125, %v1423_v4  ;;  %v4037_v53 = vsub.f32 %v4035_v49, %v4036_v52  ;;  %v1331_v36 = vmul.f32 0.6931472, %v2280_v17 }
 0x2b0   : > { %v1432_v42 = vrot.slane %v1431_v43, 4  ;;  %v1069_v34 = vadd.f32 %v1068_v14, %v1067_v12  ;;  %v1807_v28 = vadd.f32 %v1806_v7, %v1805_v5  ;;  %v1799_v16 = vrot.slane %v1798_v33, 1 }
 0x2b1   : > { %v1385_v18 = vsub.f32 %v4037_v53, %v1327_v40  ;;  %v1683_v13 = vmul.f32 0.6931472, %v2282_v32  ;;  %v1464_v6 = vsel %vm1106_vm0, %v1449_v27, %v1463_v22  ;;  %v4040_v57 = vsub.f32 %v4038_v61, %v4039_v60 }
 0x2b2   : > { %v1433_v37 = vadd.f32 %v1432_v42, %v1431_v43  ;;  %v1089_v23 = vmul.f32 0.125, %v1069_v34  ;;  %v1827_v55 = vmul.f32 0.125, %v1807_v28  ;;  %v1800_v24 = vadd.f32 %v1799_v16, %v1798_v33 }
 0x2b3   : > { %v1424_v19 = vsel %vm1388_vm7, %v1385_v18, 0.0  ;;  %v1387_v47 = vsub.f32 %v4040_v57, %v1331_v36  ;;  %v4043_v32 = vsub.f32 %v4041_v21, %v4042_v2  ;;  %v1685_v26 = vmul.f32 0.6931472, %v2284_v25 }
 0x2b4   : > { %v1425_v50 = vrot.slane %v1424_v19, 4  ;;  %v1434_v51 = vrot.slane %v1433_v37, 2  ;;  %v1109_v9 = vsel %vm1108_vm8, %v1089_v23, %v1107_v56  ;;  %v1826_v8 = vmul.f32 0.125, %v1800_v24 }
 0x2b5   : > { %v1438_v17 = vsel %vm1388_vm7, %v1387_v47, 0.0  ;;  %v1764_v46 = vsub.f32 %v4043_v32, %v1683_v13  ;;  %v1111_v35 = vsel %vm1110_vm10, %v3631_v62, %v1109_v9  ;;  %v4046_v25 = vsub.f32 %v4044_v38, %v4045_v41 }
 0x2b6   : > { %v1426_v10 = vadd.f32 %v1425_v50, %v1424_v19  ;;  %v1439_v3 = vrot.slane %v1438_v17, 4  ;;  %v1435_v39 = vadd.f32 %v1434_v51, %v1433_v37  ;;  %v1841_v56 = vsel %vm1106_vm0, %v1826_v8, %v1840_v0 }
 0x2b7   : > { %v1808_v11 = vsel %vm1027_vm1, %v1764_v46, 0.0  ;;  %v1765_v44 = vsub.f32 %v4046_v25, %v1685_v26  ;;  %v1113_v29 = vsel %vm1112_vm11, %v3640_v45, %v1111_v35  ;;  %v1842_v62 = vsel %vm1108_vm8, %v1827_v55, %v1841_v56 }
 0x2b8   : > { %v1427_v63 = vrot.slane %v1426_v10, 2  ;;  %v1440_v20 = vadd.f32 %v1439_v3, %v1438_v17  ;;  %v1436_v30 = vrot.slane %v1435_v39, 1  ;;  %1115 = vst.msk [vmem:[%s3693_s30] sm:$0xff] %vm1027_vm1, %v1113_v29  ;;  %v1809_v58 = vrot.slane %v1808_v11, 4 }
 0x2b9   : > { %v1815_v31 = vsel %vm1027_vm1, %v1765_v44, 0.0 }
 0x2ba   : > { %v1428_v1 = vadd.f32 %v1427_v63, %v1426_v10  ;;  %v1441_v54 = vrot.slane %v1440_v20, 2  ;;  %v1816_v15 = vrot.slane %v1815_v31, 4  ;;  %v1810_v59 = vadd.f32 %v1809_v58, %v1808_v11 }
 0x2bb   : > { %v1437_v0 = vadd.f32 %v1436_v30, %v1435_v39 }
 0x2bc   : > { %v1429_v12 = vrot.slane %v1428_v1, 1  ;;  %v1442_v5 = vadd.f32 %v1441_v54, %v1440_v20  ;;  %v1817_v48 = vadd.f32 %v1816_v15, %v1815_v31  ;;  %v1811_v4 = vrot.slane %v1810_v59, 2 }
 0x2bd   : > { %v1451_v27 = vmul.f32 0.125, %v1437_v0 }
 0x2be   : > { %v1430_v43 = vadd.f32 %v1429_v12, %v1428_v1  ;;  %v1443_v45 = vrot.slane %v1442_v5, 1  ;;  %v1818_v40 = vrot.slane %v1817_v48, 2  ;;  %v1812_v22 = vadd.f32 %v1811_v4, %v1810_v59 }
 0x2c0   : > { %v1450_v14 = vmul.f32 0.125, %v1430_v43  ;;  %v1444_v7 = vadd.f32 %v1443_v45, %v1442_v5  ;;  %v1819_v33 = vadd.f32 %v1818_v40, %v1817_v48  ;;  %v1813_v42 = vrot.slane %v1812_v22, 1 }
 0x2c2   : > { %v1465_v49 = vsel %vm1108_vm8, %v1450_v14, %v1464_v6  ;;  %v1452_v52 = vmul.f32 0.125, %v1444_v7  ;;  %v1820_v53 = vrot.slane %v1819_v33, 1  ;;  %v1814_v36 = vadd.f32 %v1813_v42, %v1812_v22 }
 0x2c3   : > { %v1466_v18 = vsel %vm1110_vm10, %v1451_v27, %v1465_v49 }
 0x2c4   : > { %v1467_v34 = vsel %vm1112_vm11, %v1452_v52, %v1466_v18  ;;  %v1821_v28 = vadd.f32 %v1820_v53, %v1819_v33  ;;  %v1828_v16 = vmul.f32 0.125, %v1814_v36 }
 0x2c5   : > { %1469 = vst.msk [vmem:[%s3693_s30] sm:$0xff] %vm1388_vm7, %v1467_v34 }
 0x2c6   : > { %v1829_v13 = vmul.f32 0.125, %v1821_v28  ;;  %v1843_v37 = vsel %vm1110_vm10, %v1828_v16, %v1842_v62 }
 0x2c8   : > { %v1844_v19 = vsel %vm1112_vm11, %v1829_v13, %v1843_v37 }
 0x2c9   : > { %1846 = vst.msk [vmem:[%s3693_s30 + $0x8] sm:$0xff] %vm1027_vm1, %v1844_v19 }
 0x2ca PF: > { %s15_s15 = sadd.s32 1, %s2291_s15  }
 0x2cb   : > { %p12_p6 = scmp.ge.s32.totalorder %s15_s15, 4  }
 0x2cd   :  { %14 = sbr.rel (!%p12_p6) target bundleno = 1 (0x1), region = 77 }

</bundles_post_ra>
